<compile_context>
chip_gen: v5e
topology: v5e:2x2
jax: 0.10.0
libtpu: 0.0.40
codegen_flags: <defaults>
</compile_context>

<pallas_src>
import jax
import jax.numpy as jnp
from jax.experimental import pallas as pl
from jax.experimental.pallas import tpu as pltpu  # noqa: F401  (TPU backend)

HIDDEN = 32
NUM_HEADS = 4
HEAD_DIM = HIDDEN // NUM_HEADS
LN_EPS = 1e-12             # BeitConfig.layer_norm_eps default
TEMPORAL_INIT_VALUE = 0.1  # config.temporal_model_init_value (synthetic, nonzero)


def _temporal_attn_kernel(x0_ref, x_ref, w_ref, vec_ref, o_ref):
    """Fused LN -> BeitSelfAttention -> BeitSelfOutput -> scale+residual.

    x0_ref : [t*l, c]     batch-0 tokens (row = tq*l + lq) for the attention.
    x_ref  : [b, t, l, c] full input, used only for the residual add.
    w_ref  : [c, 4c]      packed [wqkv' | wo'] (LN affine, 1/sqrt(hd) on Q and
                          the temporal `scale` already folded in).
    vec_ref: [1, 4c]      packed [bq' bk' bv' | bo'].
    o_ref  : [b, t, l, c] final output.
    """
    n, c = x0_ref.shape
    b, t, l, _ = x_ref.shape
    hd = HEAD_DIM
    c3 = 3 * c

    w = w_ref[...]                                # [c, 4c]  one lane-dense tile
    vec = vec_ref[...]                            # [1, 4c]

    x0 = x0_ref[...].astype(jnp.float32)          # [n, c]

    # --- layernorm_before: standardize only (affine folded into w/vec) ---
    mean = jnp.mean(x0, axis=-1, keepdims=True)
    var = jnp.mean(jnp.square(x0 - mean), axis=-1, keepdims=True)
    xn = (x0 - mean) * jax.lax.rsqrt(var + LN_EPS)

    # --- one full-128-lane matmul against the packed slab.  Columns 0:3c are
    #     Q|K|V (biases added from vec); columns 3c:4c are ignored garbage. ---
    # TODO(synk): cast xn/w to bf16 for the MXU on v6e/v7x once the test
    # tolerance is loosened; irrelevant at this toy size.
    qkvg = jnp.dot(xn, w, preferred_element_type=jnp.float32) + vec     # [n,4c]

    # Same-sequence additive bias: tokens (tq,lq),(tk,lk) attend iff lq == lk.
    ids_r = jax.lax.broadcasted_iota(jnp.int32, (n, n), 0)
    ids_c = jax.lax.broadcasted_iota(jnp.int32, (n, n), 1)
    if (l & (l - 1)) == 0:                        # l power of two -> cheap AND
        same_seq = (ids_r & (l - 1)) == (ids_c & (l - 1))
    else:
        same_seq = (ids_r % l) == (ids_c % l)
    bias = jnp.where(same_seq, jnp.float32(0.0), jnp.float32(-1e30))    # [n,n]

    # Per-head attention, accumulating straight into the output projection.
    out_acc = jnp.zeros((n, c), jnp.float32)
    for h in range(NUM_HEADS):                    # static unroll over heads
        lo = h * hd
        qh = qkvg[:, lo:lo + hd]                  # 1/sqrt(hd) already folded
        kh = qkvg[:, c + lo:c + lo + hd]
        vh = qkvg[:, 2 * c + lo:2 * c + lo + hd]
        s = jnp.einsum('qd,kd->qk', qh, kh,
                       preferred_element_type=jnp.float32) + bias
        m = jnp.max(s, axis=-1, keepdims=True)
        e = jnp.exp(s - m)                        # masked entries underflow to 0
        inv = pl.reciprocal(jnp.sum(e, axis=-1, keepdims=True), approx=False)
        p = e * inv
        ctx_h = jnp.dot(p, vh, preferred_element_type=jnp.float32)      # [n,hd]
        out_acc = out_acc + jnp.dot(ctx_h, w[lo:lo + hd, c3:],
                                    preferred_element_type=jnp.float32)
    # `scale` is folded into wo'/bo', so out0 is already out[0] * scale.
    out0 = (out_acc + vec[:, c3:]).reshape(t, l, c)

    # --- fused epilogue: hidden_states + out[0]*scale (broadcast over b) ---
    res = x_ref[...].astype(jnp.float32) + out0[None, :, :, :]
    o_ref[...] = res.astype(o_ref.dtype)
    # TODO(synk): present x/o as [b, t, l*c] (lane-dense 512-wide stores,
    # biggest win on v5e's single vst slot) once a bundle dump confirms the
    # 32-lane masked stores materialize; it needs a [t*l,c]->[t,l*c] relayout
    # of out0 inside the kernel.
    # TODO(synk): at real BEiT sizes (c=768, large l) add a "parallel" grid
    # over l (uses both v7x TensorCores) and size blocks for v7x's 64 MiB
    # VMEM / explicit vmem_limit_bytes; the n x n masked-score formulation is
    # quadratic and must be tiled per sequence block.


def pack_params(params):
    """One-time (model-init) folding of module parameters into two slabs.

    Returns:
      w_slab   [c, 4c] = [ ln-folded, Q-scaled wqkv | scale-folded wo ]
      vec_slab [1, 4c] = [ folded bq, bk(=0), bv    | scale-folded bo ]
    """
    c, hd = HIDDEN, HEAD_DIM
    f32 = jnp.float32
    wqkv0 = jnp.concatenate([params['wq'], params['wk'], params['wv']],
                            axis=1).astype(f32)                       # [c, 3c]
    bqkv0 = jnp.concatenate([params['bq'],
                             jnp.zeros((c,), f32),    # Beit: key has no bias
                             params['bv']]).astype(f32)               # [3c]
    # Fold LayerNorm affine:  (z*lnw + lnb) @ W + b  ==  z @ (lnw[:,None]*W) + (lnb@W + b)
    bqkv = params['ln_b'].astype(f32) @ wqkv0 + bqkv0
    wqkv = params['ln_w'].astype(f32)[:, None] * wqkv0
    # Fold 1/sqrt(head_dim) into the Q columns (weight AND bias).
    inv_sqrt_d = 1.0 / (float(hd) ** 0.5)
    col_scale = jnp.concatenate([jnp.full((c,), inv_sqrt_d, f32),
                                 jnp.ones((2 * c,), f32)])
    wqkv = wqkv * col_scale[None, :]
    bqkv = bqkv * col_scale
    # Fold the temporal `scale` parameter into the output projection.
    wo = params['wo'].astype(f32) * params['scale'].astype(f32)[None, :]
    bo = params['bo'].astype(f32) * params['scale'].astype(f32)
    w_slab = jnp.concatenate([wqkv, wo], axis=1)                # [c, 4c]=[32,128]
    vec_slab = jnp.concatenate([bqkv, bo]).reshape(1, 4 * c)    # [1, 4c]=[1,128]
    return w_slab, vec_slab


@jax.jit
def temporal_attention_beit(hidden_states, w_slab, vec_slab):
    """Forward pass of TemporalAttentionBeit. hidden_states: [b, t, l, c]."""
    b, t, l, c = hidden_states.shape
    # Batch-0 tokens, row = tq*l + lq (contiguous prefix -> cheap slice).
    x0 = hidden_states[0].reshape(t * l, c)
    # Gridless call: every operand (x: b*t*l*c*4 B, slabs ~16.5 KiB) fits in
    # VMEM on v5e/v6e/v7x with huge margin, so one step / no pipeline.
    return pl.pallas_call(
        _temporal_attn_kernel,
        out_shape=jax.ShapeDtypeStruct((b, t, l, c), hidden_states.dtype),
    )(x0, hidden_states, w_slab, vec_slab)


def reference_forward(hidden_states, params):
    """Pure-JAX reference for correctness checking (full, unoptimized path)."""
    b, t, l, c = hidden_states.shape
    x = jnp.transpose(hidden_states, (0, 2, 1, 3)).reshape(b * l, t, c)
    mean = x.mean(-1, keepdims=True)
    var = ((x - mean) ** 2).mean(-1, keepdims=True)
    xn = (x - mean) / jnp.sqrt(var + LN_EPS) * params['ln_w'] + params['ln_b']
    q = xn @ params['wq'] + params['bq']
    k = xn @ params['wk']
    v = xn @ params['wv'] + params['bv']
    H, hd = NUM_HEADS, HEAD_DIM
    qh = q.reshape(b * l, t, H, hd).transpose(0, 2, 1, 3)
    kh = k.reshape(b * l, t, H, hd).transpose(0, 2, 1, 3)
    vh = v.reshape(b * l, t, H, hd).transpose(0, 2, 1, 3)
    scores = jnp.einsum('nhqd,nhkd->nhqk', qh, kh) / jnp.sqrt(float(hd))
    probs = jax.nn.softmax(scores, axis=-1)
    ctx = jnp.einsum('nhqk,nhkd->nhqd', probs, vh).transpose(0, 2, 1, 3)
    ctx = ctx.reshape(b * l, t, c)
    out = ctx @ params['wo'] + params['bo']
    out = out.reshape(b, l, t, c).transpose(0, 2, 1, 3)
    return hidden_states + out[0] * params['scale']


if __name__ == "__main__":
    b, t, l, c = 2, 4, 16, HIDDEN
    key = jax.random.PRNGKey(0)
    (k_x, k_q, k_k, k_v, k_o,
     k_bq, k_bv, k_bo, k_lw, k_lb) = jax.random.split(key, 10)

    hidden_states = jax.random.normal(k_x, (b, t, l, c), jnp.float32)
    params = {
        'ln_w': 1.0 + 0.1 * jax.random.normal(k_lw, (c,), jnp.float32),
        'ln_b': 0.05 * jax.random.normal(k_lb, (c,), jnp.float32),
        'wq': 0.05 * jax.random.normal(k_q, (c, c), jnp.float32),
        'bq': 0.02 * jax.random.normal(k_bq, (c,), jnp.float32),
        'wk': 0.05 * jax.random.normal(k_k, (c, c), jnp.float32),
        'wv': 0.05 * jax.random.normal(k_v, (c, c), jnp.float32),
        'bv': 0.02 * jax.random.normal(k_bv, (c,), jnp.float32),
        'wo': 0.05 * jax.random.normal(k_o, (c, c), jnp.float32),
        'bo': 0.02 * jax.random.normal(k_bo, (c,), jnp.float32),
        # nn.Parameter(config.temporal_model_init_value * torch.ones(hidden_size))
        'scale': jnp.full((c,), TEMPORAL_INIT_VALUE, jnp.float32),
    }

    # One-time weight packing/folding (model init path, outside per-call jit).
    w_slab, vec_slab = pack_params(params)
    w_slab = jax.block_until_ready(w_slab)
    vec_slab = jax.block_until_ready(vec_slab)

    out = temporal_attention_beit(hidden_states, w_slab, vec_slab)
    out = jax.block_until_ready(out)

    ref = reference_forward(hidden_states, params)
    assert out.shape == hidden_states.shape
    assert jnp.allclose(out, ref, rtol=1e-4, atol=1e-4), \
        f"max abs err {float(jnp.max(jnp.abs(out - ref)))}"
    print("KERNEL_OK")
</pallas_src>

<mosaic_0001>
module attributes {stable_mosaic.version = 11 : i64} {
  func.func @_temporal_attn_kernel(%arg0: memref<64x32xf32, #tpu.memory_space<vmem>>, %arg1: memref<2x4x16x32xf32, #tpu.memory_space<vmem>>, %arg2: memref<32x128xf32, #tpu.memory_space<vmem>>, %arg3: memref<1x128xf32, #tpu.memory_space<vmem>>, %arg4: memref<2x4x16x32xf32, #tpu.memory_space<vmem>>) attributes {dimension_semantics = [], scalar_prefetch = 0 : i64, scratch_operands = 0 : i64, tpu.core_type = #tpu.core_type<tc>} {
    %c0 = arith.constant 0 : index
    %c0_0 = arith.constant 0 : index
    %0 = vector.load %arg2[%c0, %c0_0] : memref<32x128xf32, #tpu.memory_space<vmem>>, vector<32x128xf32>
    %c0_1 = arith.constant 0 : index
    %c0_2 = arith.constant 0 : index
    %1 = vector.load %arg3[%c0_1, %c0_2] : memref<1x128xf32, #tpu.memory_space<vmem>>, vector<1x128xf32>
    %c0_3 = arith.constant 0 : index
    %c0_4 = arith.constant 0 : index
    %2 = vector.load %arg0[%c0_3, %c0_4] : memref<64x32xf32, #tpu.memory_space<vmem>>, vector<64x32xf32>
    %cst = arith.constant dense<0.000000e+00> : vector<64xf32>
    %3 = vector.multi_reduction <add>, %2, %cst [1] : vector<64x32xf32> to vector<64xf32>
    %4 = vector.shape_cast %3 : vector<64xf32> to vector<64x1xf32>
    %cst_5 = arith.constant 3.200000e+01 : f32
    %5 = vector.broadcast %cst_5 : f32 to vector<64x1xf32>
    %6 = arith.divf %4, %5 : vector<64x1xf32>
    %7 = vector.broadcast %6 : vector<64x1xf32> to vector<64x32xf32>
    %8 = arith.subf %2, %7 : vector<64x32xf32>
    %9 = arith.mulf %8, %8 : vector<64x32xf32>
    %cst_6 = arith.constant dense<0.000000e+00> : vector<64xf32>
    %10 = vector.multi_reduction <add>, %9, %cst_6 [1] : vector<64x32xf32> to vector<64xf32>
    %11 = vector.shape_cast %10 : vector<64xf32> to vector<64x1xf32>
    %cst_7 = arith.constant 3.200000e+01 : f32
    %12 = vector.broadcast %cst_7 : f32 to vector<64x1xf32>
    %13 = arith.divf %11, %12 : vector<64x1xf32>
    %14 = vector.broadcast %6 : vector<64x1xf32> to vector<64x32xf32>
    %15 = arith.subf %2, %14 : vector<64x32xf32>
    %cst_8 = arith.constant 9.99999996E-13 : f32
    %16 = vector.broadcast %cst_8 : f32 to vector<64x1xf32>
    %17 = arith.addf %13, %16 : vector<64x1xf32>
    %18 = math.rsqrt %17 : vector<64x1xf32>
    %19 = vector.broadcast %18 : vector<64x1xf32> to vector<64x32xf32>
    %20 = arith.mulf %15, %19 : vector<64x32xf32>
    %cst_9 = arith.constant dense<0.000000e+00> : vector<64x128xf32>
    %21 = tpu.matmul %20, %0, %cst_9 {dimension_numbers = #tpu.dot_dimension_numbers<[1], [0], [0], [1], [0, 0, 1, 1], [], []>} : vector<64x32xf32>, vector<32x128xf32>, vector<64x128xf32> -> vector<64x128xf32>
    %22 = vector.broadcast %1 : vector<1x128xf32> to vector<64x128xf32>
    %23 = arith.addf %21, %22 : vector<64x128xf32>
    %24 = tpu.iota {dimensions = array<i32: 0>} : vector<64x64xi32>
    %25 = tpu.iota {dimensions = array<i32: 1>} : vector<64x64xi32>
    %c15_i32 = arith.constant 15 : i32
    %26 = vector.broadcast %c15_i32 : i32 to vector<64x64xi32>
    %27 = arith.andi %24, %26 : vector<64x64xi32>
    %c15_i32_10 = arith.constant 15 : i32
    %28 = vector.broadcast %c15_i32_10 : i32 to vector<64x64xi32>
    %29 = arith.andi %25, %28 : vector<64x64xi32>
    %30 = arith.cmpi eq, %27, %29 : vector<64x64xi32>
    %cst_11 = arith.constant 0.000000e+00 : f32
    %cst_12 = arith.constant -1.000000e+30 : f32
    %31 = vector.broadcast %cst_11 : f32 to vector<64x64xf32>
    %32 = vector.broadcast %cst_12 : f32 to vector<64x64xf32>
    %33 = arith.select %30, %31, %32 : vector<64x64xi1>, vector<64x64xf32>
    %cst_13 = arith.constant 0.000000e+00 : f32
    %34 = vector.broadcast %cst_13 : f32 to vector<64x32xf32>
    %35 = vector.extract_strided_slice %23 {offsets = [0, 0], sizes = [64, 8], strides = [1, 1]} : vector<64x128xf32> to vector<64x8xf32>
    %36 = vector.extract_strided_slice %23 {offsets = [0, 32], sizes = [64, 8], strides = [1, 1]} : vector<64x128xf32> to vector<64x8xf32>
    %37 = vector.extract_strided_slice %23 {offsets = [0, 64], sizes = [64, 8], strides = [1, 1]} : vector<64x128xf32> to vector<64x8xf32>
    "tpu.trace_start"() <{level = 10 : i32, message = "qd,kd->qk"}> : () -> ()
    %cst_14 = arith.constant dense<0.000000e+00> : vector<64x64xf32>
    %38 = tpu.matmul %35, %36, %cst_14 {dimension_numbers = #tpu.dot_dimension_numbers<[1], [1], [0], [0], [0, 0, 1, 0], [], []>} : vector<64x8xf32>, vector<64x8xf32>, vector<64x64xf32> -> vector<64x64xf32>
    "tpu.trace_stop"() : () -> ()
    %39 = arith.addf %38, %33 : vector<64x64xf32>
    %cst_15 = arith.constant dense<0xFF800000> : vector<64xf32>
    %40 = vector.multi_reduction <maximumf>, %39, %cst_15 [1] : vector<64x64xf32> to vector<64xf32>
    %41 = vector.shape_cast %40 : vector<64xf32> to vector<64x1xf32>
    %42 = vector.broadcast %41 : vector<64x1xf32> to vector<64x64xf32>
    %43 = arith.subf %39, %42 : vector<64x64xf32>
    %44 = math.exp %43 : vector<64x64xf32>
    %cst_16 = arith.constant dense<0.000000e+00> : vector<64xf32>
    %45 = vector.multi_reduction <add>, %44, %cst_16 [1] : vector<64x64xf32> to vector<64xf32>
    %46 = vector.shape_cast %45 : vector<64xf32> to vector<64x1xf32>
    %47 = tpu.reciprocal %46 : vector<64x1xf32> -> vector<64x1xf32>
    %48 = vector.broadcast %47 : vector<64x1xf32> to vector<64x64xf32>
    %49 = arith.mulf %44, %48 : vector<64x64xf32>
    %cst_17 = arith.constant dense<0.000000e+00> : vector<64x8xf32>
    %50 = tpu.matmul %49, %37, %cst_17 {dimension_numbers = #tpu.dot_dimension_numbers<[1], [0], [0], [1], [0, 0, 1, 1], [], []>} : vector<64x64xf32>, vector<64x8xf32>, vector<64x8xf32> -> vector<64x8xf32>
    %51 = vector.extract_strided_slice %0 {offsets = [0, 96], sizes = [8, 32], strides = [1, 1]} : vector<32x128xf32> to vector<8x32xf32>
    %cst_18 = arith.constant dense<0.000000e+00> : vector<64x32xf32>
    %52 = tpu.matmul %50, %51, %cst_18 {dimension_numbers = #tpu.dot_dimension_numbers<[1], [0], [0], [1], [0, 0, 1, 1], [], []>} : vector<64x8xf32>, vector<8x32xf32>, vector<64x32xf32> -> vector<64x32xf32>
    %53 = arith.addf %34, %52 : vector<64x32xf32>
    %54 = vector.extract_strided_slice %23 {offsets = [0, 8], sizes = [64, 8], strides = [1, 1]} : vector<64x128xf32> to vector<64x8xf32>
    %55 = vector.extract_strided_slice %23 {offsets = [0, 40], sizes = [64, 8], strides = [1, 1]} : vector<64x128xf32> to vector<64x8xf32>
    %56 = vector.extract_strided_slice %23 {offsets = [0, 72], sizes = [64, 8], strides = [1, 1]} : vector<64x128xf32> to vector<64x8xf32>
    "tpu.trace_start"() <{level = 10 : i32, message = "qd,kd->qk"}> : () -> ()
    %cst_19 = arith.constant dense<0.000000e+00> : vector<64x64xf32>
    %57 = tpu.matmul %54, %55, %cst_19 {dimension_numbers = #tpu.dot_dimension_numbers<[1], [1], [0], [0], [0, 0, 1, 0], [], []>} : vector<64x8xf32>, vector<64x8xf32>, vector<64x64xf32> -> vector<64x64xf32>
    "tpu.trace_stop"() : () -> ()
    %58 = arith.addf %57, %33 : vector<64x64xf32>
    %cst_20 = arith.constant dense<0xFF800000> : vector<64xf32>
    %59 = vector.multi_reduction <maximumf>, %58, %cst_20 [1] : vector<64x64xf32> to vector<64xf32>
    %60 = vector.shape_cast %59 : vector<64xf32> to vector<64x1xf32>
    %61 = vector.broadcast %60 : vector<64x1xf32> to vector<64x64xf32>
    %62 = arith.subf %58, %61 : vector<64x64xf32>
    %63 = math.exp %62 : vector<64x64xf32>
    %cst_21 = arith.constant dense<0.000000e+00> : vector<64xf32>
    %64 = vector.multi_reduction <add>, %63, %cst_21 [1] : vector<64x64xf32> to vector<64xf32>
    %65 = vector.shape_cast %64 : vector<64xf32> to vector<64x1xf32>
    %66 = tpu.reciprocal %65 : vector<64x1xf32> -> vector<64x1xf32>
    %67 = vector.broadcast %66 : vector<64x1xf32> to vector<64x64xf32>
    %68 = arith.mulf %63, %67 : vector<64x64xf32>
    %cst_22 = arith.constant dense<0.000000e+00> : vector<64x8xf32>
    %69 = tpu.matmul %68, %56, %cst_22 {dimension_numbers = #tpu.dot_dimension_numbers<[1], [0], [0], [1], [0, 0, 1, 1], [], []>} : vector<64x64xf32>, vector<64x8xf32>, vector<64x8xf32> -> vector<64x8xf32>
    %70 = vector.extract_strided_slice %0 {offsets = [8, 96], sizes = [8, 32], strides = [1, 1]} : vector<32x128xf32> to vector<8x32xf32>
    %cst_23 = arith.constant dense<0.000000e+00> : vector<64x32xf32>
    %71 = tpu.matmul %69, %70, %cst_23 {dimension_numbers = #tpu.dot_dimension_numbers<[1], [0], [0], [1], [0, 0, 1, 1], [], []>} : vector<64x8xf32>, vector<8x32xf32>, vector<64x32xf32> -> vector<64x32xf32>
    %72 = arith.addf %53, %71 : vector<64x32xf32>
    %73 = vector.extract_strided_slice %23 {offsets = [0, 16], sizes = [64, 8], strides = [1, 1]} : vector<64x128xf32> to vector<64x8xf32>
    %74 = vector.extract_strided_slice %23 {offsets = [0, 48], sizes = [64, 8], strides = [1, 1]} : vector<64x128xf32> to vector<64x8xf32>
    %75 = vector.extract_strided_slice %23 {offsets = [0, 80], sizes = [64, 8], strides = [1, 1]} : vector<64x128xf32> to vector<64x8xf32>
    "tpu.trace_start"() <{level = 10 : i32, message = "qd,kd->qk"}> : () -> ()
    %cst_24 = arith.constant dense<0.000000e+00> : vector<64x64xf32>
    %76 = tpu.matmul %73, %74, %cst_24 {dimension_numbers = #tpu.dot_dimension_numbers<[1], [1], [0], [0], [0, 0, 1, 0], [], []>} : vector<64x8xf32>, vector<64x8xf32>, vector<64x64xf32> -> vector<64x64xf32>
    "tpu.trace_stop"() : () -> ()
    %77 = arith.addf %76, %33 : vector<64x64xf32>
    %cst_25 = arith.constant dense<0xFF800000> : vector<64xf32>
    %78 = vector.multi_reduction <maximumf>, %77, %cst_25 [1] : vector<64x64xf32> to vector<64xf32>
    %79 = vector.shape_cast %78 : vector<64xf32> to vector<64x1xf32>
    %80 = vector.broadcast %79 : vector<64x1xf32> to vector<64x64xf32>
    %81 = arith.subf %77, %80 : vector<64x64xf32>
    %82 = math.exp %81 : vector<64x64xf32>
    %cst_26 = arith.constant dense<0.000000e+00> : vector<64xf32>
    %83 = vector.multi_reduction <add>, %82, %cst_26 [1] : vector<64x64xf32> to vector<64xf32>
    %84 = vector.shape_cast %83 : vector<64xf32> to vector<64x1xf32>
    %85 = tpu.reciprocal %84 : vector<64x1xf32> -> vector<64x1xf32>
    %86 = vector.broadcast %85 : vector<64x1xf32> to vector<64x64xf32>
    %87 = arith.mulf %82, %86 : vector<64x64xf32>
    %cst_27 = arith.constant dense<0.000000e+00> : vector<64x8xf32>
    %88 = tpu.matmul %87, %75, %cst_27 {dimension_numbers = #tpu.dot_dimension_numbers<[1], [0], [0], [1], [0, 0, 1, 1], [], []>} : vector<64x64xf32>, vector<64x8xf32>, vector<64x8xf32> -> vector<64x8xf32>
    %89 = vector.extract_strided_slice %0 {offsets = [16, 96], sizes = [8, 32], strides = [1, 1]} : vector<32x128xf32> to vector<8x32xf32>
    %cst_28 = arith.constant dense<0.000000e+00> : vector<64x32xf32>
    %90 = tpu.matmul %88, %89, %cst_28 {dimension_numbers = #tpu.dot_dimension_numbers<[1], [0], [0], [1], [0, 0, 1, 1], [], []>} : vector<64x8xf32>, vector<8x32xf32>, vector<64x32xf32> -> vector<64x32xf32>
    %91 = arith.addf %72, %90 : vector<64x32xf32>
    %92 = vector.extract_strided_slice %23 {offsets = [0, 24], sizes = [64, 8], strides = [1, 1]} : vector<64x128xf32> to vector<64x8xf32>
    %93 = vector.extract_strided_slice %23 {offsets = [0, 56], sizes = [64, 8], strides = [1, 1]} : vector<64x128xf32> to vector<64x8xf32>
    %94 = vector.extract_strided_slice %23 {offsets = [0, 88], sizes = [64, 8], strides = [1, 1]} : vector<64x128xf32> to vector<64x8xf32>
    "tpu.trace_start"() <{level = 10 : i32, message = "qd,kd->qk"}> : () -> ()
    %cst_29 = arith.constant dense<0.000000e+00> : vector<64x64xf32>
    %95 = tpu.matmul %92, %93, %cst_29 {dimension_numbers = #tpu.dot_dimension_numbers<[1], [1], [0], [0], [0, 0, 1, 0], [], []>} : vector<64x8xf32>, vector<64x8xf32>, vector<64x64xf32> -> vector<64x64xf32>
    "tpu.trace_stop"() : () -> ()
    %96 = arith.addf %95, %33 : vector<64x64xf32>
    %cst_30 = arith.constant dense<0xFF800000> : vector<64xf32>
    %97 = vector.multi_reduction <maximumf>, %96, %cst_30 [1] : vector<64x64xf32> to vector<64xf32>
    %98 = vector.shape_cast %97 : vector<64xf32> to vector<64x1xf32>
    %99 = vector.broadcast %98 : vector<64x1xf32> to vector<64x64xf32>
    %100 = arith.subf %96, %99 : vector<64x64xf32>
    %101 = math.exp %100 : vector<64x64xf32>
    %cst_31 = arith.constant dense<0.000000e+00> : vector<64xf32>
    %102 = vector.multi_reduction <add>, %101, %cst_31 [1] : vector<64x64xf32> to vector<64xf32>
    %103 = vector.shape_cast %102 : vector<64xf32> to vector<64x1xf32>
    %104 = tpu.reciprocal %103 : vector<64x1xf32> -> vector<64x1xf32>
    %105 = vector.broadcast %104 : vector<64x1xf32> to vector<64x64xf32>
    %106 = arith.mulf %101, %105 : vector<64x64xf32>
    %cst_32 = arith.constant dense<0.000000e+00> : vector<64x8xf32>
    %107 = tpu.matmul %106, %94, %cst_32 {dimension_numbers = #tpu.dot_dimension_numbers<[1], [0], [0], [1], [0, 0, 1, 1], [], []>} : vector<64x64xf32>, vector<64x8xf32>, vector<64x8xf32> -> vector<64x8xf32>
    %108 = vector.extract_strided_slice %0 {offsets = [24, 96], sizes = [8, 32], strides = [1, 1]} : vector<32x128xf32> to vector<8x32xf32>
    %cst_33 = arith.constant dense<0.000000e+00> : vector<64x32xf32>
    %109 = tpu.matmul %107, %108, %cst_33 {dimension_numbers = #tpu.dot_dimension_numbers<[1], [0], [0], [1], [0, 0, 1, 1], [], []>} : vector<64x8xf32>, vector<8x32xf32>, vector<64x32xf32> -> vector<64x32xf32>
    %110 = arith.addf %91, %109 : vector<64x32xf32>
    %111 = vector.extract_strided_slice %1 {offsets = [0, 96], sizes = [1, 32], strides = [1, 1]} : vector<1x128xf32> to vector<1x32xf32>
    %112 = vector.broadcast %111 : vector<1x32xf32> to vector<64x32xf32>
    %113 = arith.addf %110, %112 : vector<64x32xf32>
    %114 = vector.shape_cast %113 : vector<64x32xf32> to vector<4x16x32xf32>
    %c0_34 = arith.constant 0 : index
    %c0_35 = arith.constant 0 : index
    %c0_36 = arith.constant 0 : index
    %c0_37 = arith.constant 0 : index
    %115 = vector.load %arg1[%c0_34, %c0_35, %c0_36, %c0_37] : memref<2x4x16x32xf32, #tpu.memory_space<vmem>>, vector<2x4x16x32xf32>
    %116 = vector.shape_cast %114 : vector<4x16x32xf32> to vector<1x4x16x32xf32>
    %117 = vector.broadcast %116 : vector<1x4x16x32xf32> to vector<2x4x16x32xf32>
    %118 = arith.addf %115, %117 : vector<2x4x16x32xf32>
    %c0_38 = arith.constant 0 : index
    %c0_39 = arith.constant 0 : index
    %c0_40 = arith.constant 0 : index
    %c0_41 = arith.constant 0 : index
    %119 = vector.load %arg4[%c0_38, %c0_39, %c0_40, %c0_41] : memref<2x4x16x32xf32, #tpu.memory_space<vmem>>, vector<2x4x16x32xf32>
    tpu.vector_store %arg4[%c0_38, %c0_39, %c0_40, %c0_41], %118 {strides = array<i32>} : memref<2x4x16x32xf32, #tpu.memory_space<vmem>>, vector<2x4x16x32xf32>,
    return
  }
}

</mosaic_0001>

<bundles_post_ra>
// kernel: temporal_attention_beit.1
= control target key start
LH: loop header
LB: loop body
LE: loop exit
PB: predicated region body
PF: predicated region fallthrough
CT: control target
= control target key end

     0   :  { %9 = vsyncpa [#allocation3], 0  ;;  %s3831_s0 = inlined_call_operand.vmem [shape: f32[64,32], index: 0, kind: input, shape index: {}]   ;;  %s3832_s1 = inlined_call_operand.hbm [shape: f32[2,4,16,32], index: 1, kind: input, shape index: {}]   ;;  %s3833_s2 = inlined_call_operand.vmem [shape: f32[32,128], index: 2, kind: input, shape index: {}]   ;;  %s3834_s3 = inlined_call_operand.vmem [shape: f32[1,128], index: 3, kind: input, shape index: {}]   ;;  %s3835_s4 = inlined_call_operand.hbm [shape: f32[2,4,16,32], index: 4, kind: output, shape index: {}]  }
   0x1   :  { %10 = vsyncpa [#allocation4], 0  ;;  %s17_s17 = sshll.u32 %s3832_s1, 4  ;;  %s2684_s18 = smov [#allocation2]   ;;  %s18_s17 = int_to_ptr.hbm [resolvable:$true] %s17_s17 }
   0x2   :  { %s19_s19 = sshll.u32 %s2684_s18, 4  ;;  %s2685_s20 = smov 128   ;;  %s20_s19 = int_to_ptr.vmem [resolvable:$true] %s19_s19 }
   0x3   :  { %s2686_s21 = smov 8  }
   0x4   :  { %25 = dma.hbm_to_vmem [thread:$0]  %s18_s17, 2048, %s20_s19, [#allocation3], %s2685_s20, %s2685_s20, %s2686_s21  }
   0x5   :  { %2680 = dma.done.wait [#allocation3], 2048  }
   0x6   :  { %2681 = vsyncadd [#allocation3], 4294965248  ;;  %vm47_vm0 = vcmask 261120   ;;  %v46_v0 = vld [vmem:[%s3831_s0 + $0x38] sm:$0xff]  ;;  %v45_v1 = vld [vmem:[%s3831_s0 + $0x30] sm:$0xff]  ;;  %v2687_v16 = vmov 32.0  }
   0x7   :  { %v43_v2 = vld [vmem:[%s3831_s0 + $0x20] sm:$0xff]  ;;  %v69_v3 = vsel %vm47_vm0, %v46_v0, 0.0  ;;  %v66_v4 = vsel %vm47_vm0, %v45_v1, 0.0  ;;  %v40_v6 = vld [vmem:[%s3831_s0 + $0x8] sm:$0xff]  ;;  %v42_v12 = vld [vmem:[%s3831_s0 + $0x18] sm:$0xff]  ;;  %2482 = vrcp.f32 %v2687_v16  ;;  %s2688_s22 = smov 96  }
   0x8   :  { %v60_v5 = vsel %vm47_vm0, %v43_v2, 0.0  ;;  %70 = vadd.xlane.f32.xlu2 %v69_v3  ;;  %67 = vadd.xlane.f32.xlu1 %v66_v4  ;;  %v39_v7 = vld [vmem:[%s3831_s0] sm:$0xff]  ;;  %v44_v8 = vld [vmem:[%s3831_s0 + $0x28] sm:$0xff]  ;;  %v51_v9 = vsel %vm47_vm0, %v40_v6, 0.0  ;;  %v41_v13 = vld [vmem:[%s3831_s0 + $0x10] sm:$0xff]  ;;  %v57_v14 = vsel %vm47_vm0, %v42_v12, 0.0 }
   0x9   :  { %61 = vadd.xlane.f32.xlu0 %v60_v5  ;;  %v48_v10 = vsel %vm47_vm0, %v39_v7, 0.0  ;;  %v63_v11 = vsel %vm47_vm0, %v44_v8, 0.0  ;;  %v54_v15 = vsel %vm47_vm0, %v41_v13, 0.0  ;;  %v37_v63 = vld [vmem:[%s3833_s2 + $0x18] sm:$0xff]  ;;  %s2689_s23 = smov 88   ;;  %s2690_s24 = smov 64  }
   0xa   :  { %2379 = vmatpush.msra.mxu2 %v37_v63  ;;  %270 = vmatpush.msra.mxu0 %v37_v63  ;;  %s2691_s25 = smov 120   ;;  %s2692_s1 = smov 32  }
   0xb   :  { %s2694_s26 = smov 80   ;;  %s2695_s27 = smov 72  }
   0xc   :  { %s2696_s28 = smov 112   ;;  %s2697_s29 = smov 104  }
   0xd   :  { %v2483_v17 = vpop.eup %2482  ;;  %s2698_s30 = smov 56   ;;  %s2699_s5 = smov 40  }
   0xe   :  { %v73_v18 = vmul.f32 32.0, %v2483_v17  ;;  %vm77_vm1 = vweird.f32 %v2483_v17  ;;  %s2700_s6 = smov 48   ;;  %s2230_s16 = sshll.u32 %s3835_s4, 4  ;;  %s2231_s16 = int_to_ptr.hbm [resolvable:$true] %s2230_s16 }
  0x10   :  { %52 = vadd.xlane.f32.xlu2 %v51_v9  ;;  %49 = vadd.xlane.f32.xlu1 %v48_v10  ;;  %v74_v19 = vsub.f32 1.0, %v73_v18 }
  0x11   :  { %64 = vadd.xlane.f32.xlu0 %v63_v11 }
  0x12   :  { %v75_v20 = vmul.f32 %v2483_v17, %v74_v19 }
  0x14   :  { %v76_v21 = vadd.f32 %v2483_v17, %v75_v20 }
  0x16   :  { %v2765_v22 = vsel %vm77_vm1, %v2483_v17, %v76_v21 }
  0x18   :  { %58 = vadd.xlane.f32.xlu1 %v57_v14 }
  0x19   :  { %55 = vadd.xlane.f32.xlu0 %v54_v15 }
  0x7b   :  { %v71_v23 = vpop.xlane.xlu2 %70  ;;  %v68_v24 = vpop.xlane.xlu1 %67 }
  0x7c   :  { %v85_v25 = vmul.f32 %v2765_v22, %v68_v24  ;;  %v62_v26 = vpop.xlane.xlu0 %61  ;;  %v86_v39 = vmul.f32 %v2765_v22, %v71_v23 }
  0x7d   :  { %v83_v27 = vmul.f32 %v2765_v22, %v62_v26 }
  0x7e   :  { %v2769_v28 = vsub.f32 %v45_v1, %v85_v25  ;;  %v2793_v46 = vsub.f32 %v46_v0, %v86_v39  ;;  %v36_v0 = vld [vmem:[%s3833_s2 + $0x10] sm:$0xff]  ;;  %v35_v1 = vld [vmem:[%s3833_s2 + $0x8] sm:$0xff] }
  0x7f   :  { %v2771_v29 = vsub.f32 %v43_v2, %v83_v27  ;;  %2380 = vmatpush.msra.mxu2 %v36_v0  ;;  %271 = vmatpush.msra.mxu0 %v36_v0  ;;  %v2827_v2 = vld [vmem:[%s3833_s2] sm:$0xff] }
  0x80   :  { %v101_v30 = vmul.f32 %v2769_v28, %v2769_v28  ;;  %v102_v54 = vmul.f32 %v2793_v46, %v2793_v46 }
  0x81   :  { %v99_v31 = vmul.f32 %v2771_v29, %v2771_v29  ;;  %2381 = vmatpush.msra.mxu2 %v35_v1  ;;  %272 = vmatpush.msra.mxu0 %v35_v1 }
  0x82   :  { %v121_v32 = vsel %vm47_vm0, %v101_v30, 0.0  ;;  %v124_v57 = vsel %vm47_vm0, %v102_v54, 0.0 }
  0x83   :  { %v115_v33 = vsel %vm47_vm0, %v99_v31, 0.0  ;;  %v53_v34 = vpop.xlane.xlu2 %52  ;;  %122 = vadd.xlane.f32.xlu1 %v121_v32  ;;  %v50_v35 = vpop.xlane.xlu1 %49  ;;  %2382 = vmatpush.msra.mxu2 %v2827_v2 }
  0x84   :  { %v65_v36 = vpop.xlane.xlu0 %64  ;;  %116 = vadd.xlane.f32.xlu2 %v115_v33  ;;  %v80_v37 = vmul.f32 %v2765_v22, %v53_v34  ;;  %v79_v38 = vmul.f32 %v2765_v22, %v50_v35  ;;  %273 = vmatpush.msra.mxu0 %v2827_v2 }
  0x85   :  { %v84_v40 = vmul.f32 %v2765_v22, %v65_v36 }
  0x86   :  { %v2783_v41 = vsub.f32 %v40_v6, %v80_v37  ;;  %v2785_v42 = vsub.f32 %v39_v7, %v79_v38 }
  0x87   :  { %v2787_v43 = vsub.f32 %v44_v8, %v84_v40 }
  0x88   :  { %v96_v44 = vmul.f32 %v2783_v41, %v2783_v41  ;;  %v95_v45 = vmul.f32 %v2785_v42, %v2785_v42 }
  0x89   :  { %v100_v47 = vmul.f32 %v2787_v43, %v2787_v43 }
  0x8a   :  { %v106_v48 = vsel %vm47_vm0, %v96_v44, 0.0  ;;  %v103_v49 = vsel %vm47_vm0, %v95_v45, 0.0 }
  0x8b   :  { %v118_v50 = vsel %vm47_vm0, %v100_v47, 0.0  ;;  %107 = vadd.xlane.f32.xlu1 %v106_v48  ;;  %v59_v51 = vpop.xlane.xlu1 %58 }
  0x8c   :  { %119 = vadd.xlane.f32.xlu0 %v118_v50  ;;  %v56_v52 = vpop.xlane.xlu0 %55  ;;  %104 = vadd.xlane.f32.xlu2 %v103_v49  ;;  %v82_v55 = vmul.f32 %v2765_v22, %v59_v51 }
  0x8d   :  { %v81_v53 = vmul.f32 %v2765_v22, %v56_v52 }
  0x8e   :  { %v2809_v59 = vsub.f32 %v42_v12, %v82_v55 }
  0x8f   :  { %v2804_v56 = vsub.f32 %v41_v13, %v81_v53 }
  0x90   :  { %v98_v61 = vmul.f32 %v2809_v59, %v2809_v59 }
  0x91   :  { %v97_v58 = vmul.f32 %v2804_v56, %v2804_v56 }
  0x92   :  { %v112_v62 = vsel %vm47_vm0, %v98_v61, 0.0 }
  0x93   :  { %v109_v60 = vsel %vm47_vm0, %v97_v58, 0.0 }
  0x94   :  { %125 = vadd.xlane.f32.xlu0 %v124_v57  ;;  %110 = vadd.xlane.f32.xlu2 %v109_v60 }
  0x9c   :  { %113 = vadd.xlane.f32.xlu0 %v112_v62 }
  0xf6   :  { %v123_v3 = vpop.xlane.xlu1 %122 }
  0xf7   :  { %v117_v4 = vpop.xlane.xlu2 %116  ;;  %v133_v5 = vmul.f32 %v123_v3, %v2765_v22 }
  0xf8   :  { %v131_v6 = vmul.f32 %v117_v4, %v2765_v22 }
  0xf9   :  { %v2833_v8 = vadd.f32 1e-12, %v133_v5 }
  0xfa   :  { %v139_v7 = vadd.f32 1e-12, %v131_v6 }
  0xfb   :  { %vm209_vm8 = vweird.f32 %v2833_v8 }
  0xfc   :  { %2484 = vrsqrt.f32 %v139_v7  ;;  %vm189_vm3 = vweird.f32 %v139_v7 }
  0xfd   :  { %2486 = vrsqrt.f32 %v2833_v8 }
  0xfe   :  { %v108_v9 = vpop.xlane.xlu1 %107 }
  0xff   :  { %v120_v10 = vpop.xlane.xlu0 %119  ;;  %v105_v11 = vpop.xlane.xlu2 %104  ;;  %v128_v12 = vmul.f32 %v108_v9, %v2765_v22 }
 0x100   :  { %v132_v13 = vmul.f32 %v120_v10, %v2765_v22  ;;  %v127_v14 = vmul.f32 %v105_v11, %v2765_v22 }
 0x101   :  { %v2839_v15 = vadd.f32 1e-12, %v128_v12 }
 0x102   :  { %v2485_v16 = vpop.eup %2484  ;;  %v140_v17 = vadd.f32 1e-12, %v132_v13  ;;  %v135_v18 = vadd.f32 1e-12, %v127_v14 }
 0x103   :  { %v184_v19 = vmul.f32 %v2485_v16, %v139_v7  ;;  %2488 = vrsqrt.f32 %v2839_v15  ;;  %v2842_v20 = vpop.eup %2486  ;;  %vm190_vm2 = vweird.f32 %v2485_v16  ;;  %vm159_vm13 = vweird.f32 %v2839_v15 }
 0x104   :  { %2490 = vrsqrt.f32 %v140_v17  ;;  %v204_v24 = vmul.f32 %v2842_v20, %v2833_v8  ;;  %vm191_vm4 = vmor %vm189_vm3, %vm190_vm2  ;;  %vm149_vm5 = vweird.f32 %v135_v18  ;;  %vm199_vm9 = vweird.f32 %v140_v17 }
 0x105   :  { %v185_v21 = vmul.f32 %v2485_v16, %v184_v19  ;;  %2492 = vrsqrt.f32 %v135_v18  ;;  %vm210_vm12 = vweird.f32 %v2842_v20 }
 0x106   :  { %v205_v38 = vmul.f32 %v2842_v20, %v204_v24  ;;  %vm211_vm15 = vmor %vm209_vm8, %vm210_vm12 }
 0x107   :  { %v186_v23 = vmul.f32 0.5, %v185_v21  ;;  %v126_v25 = vpop.xlane.xlu0 %125  ;;  %v111_v26 = vpop.xlane.xlu2 %110 }
 0x108   :  { %v134_v27 = vmul.f32 %v126_v25, %v2765_v22  ;;  %v129_v30 = vmul.f32 %v111_v26, %v2765_v22  ;;  %v206_v51 = vmul.f32 0.5, %v205_v38 }
 0x109   :  { %v2848_v31 = vpop.eup %2488  ;;  %v187_v32 = vsub.f32 1.5, %v186_v23 }
 0x10a   :  { %v2491_v33 = vpop.eup %2490  ;;  %v154_v34 = vmul.f32 %v2848_v31, %v2839_v15  ;;  %v2852_v35 = vadd.f32 1e-12, %v134_v27  ;;  %v2854_v36 = vadd.f32 1e-12, %v129_v30  ;;  %vm160_vm14 = vweird.f32 %v2848_v31 }
 0x10b   :  { %v2493_v37 = vpop.eup %2492  ;;  %v194_v39 = vmul.f32 %v2491_v33, %v140_v17  ;;  %v188_v40 = vmul.f32 %v2485_v16, %v187_v32  ;;  %vm200_vm7 = vweird.f32 %v2491_v33  ;;  %vm161_vm1 = vmor %vm159_vm13, %vm160_vm14  ;;  %vm433_vm13 = vcmask 523264  }
 0x10c   :  { %v144_v44 = vmul.f32 %v2493_v37, %v135_v18  ;;  %v155_v45 = vmul.f32 %v2848_v31, %v154_v34  ;;  %2494 = vrsqrt.f32 %v2852_v35  ;;  %vm150_vm6 = vweird.f32 %v2493_v37  ;;  %vm201_vm11 = vmor %vm199_vm9, %vm200_vm7 }
 0x10d   :  { %v195_v47 = vmul.f32 %v2491_v33, %v194_v39  ;;  %2496 = vrsqrt.f32 %v2854_v36  ;;  %v192_v48 = vsel %vm191_vm4, %v2485_v16, %v188_v40  ;;  %vm2866_vm10 = vmor %vm149_vm5, %vm150_vm6  ;;  %vm169_vm2 = vweird.f32 %v2854_v36 }
 0x10e   :  { %v145_v49 = vmul.f32 %v2493_v37, %v144_v44  ;;  %v227_v50 = vmul.f32 %v192_v48, %v2771_v29  ;;  %v156_v55 = vmul.f32 0.5, %v155_v45  ;;  %v207_v29 = vsub.f32 1.5, %v206_v51 }
 0x10f   :  { %v196_v52 = vmul.f32 0.5, %v195_v47  ;;  %v114_v53 = vpop.xlane.xlu0 %113  ;;  %vm219_vm4 = vweird.f32 %v2852_v35 }
 0x110   :  { %v146_v54 = vmul.f32 0.5, %v145_v49  ;;  %v130_v57 = vmul.f32 %v114_v53, %v2765_v22  ;;  %2247 = vmatmul.msk.f32.vlgmr.msra.gmra.mxu2 %vm47_vm0, %v227_v50  ;;  %v157_v3 = vsub.f32 1.5, %v156_v55  ;;  %v208_v14 = vmul.f32 %v2842_v20, %v207_v29 }
 0x111   :  { %v197_v58 = vsub.f32 1.5, %v196_v52 }
 0x112   :  { %v2495_v60 = vpop.eup %2494  ;;  %v147_v61 = vsub.f32 1.5, %v146_v54  ;;  %v138_v62 = vadd.f32 1e-12, %v130_v57  ;;  %v158_v15 = vmul.f32 %v2848_v31, %v157_v3 }
 0x113   :  { %v2497_v63 = vpop.eup %2496  ;;  %v214_v0 = vmul.f32 %v2495_v60, %v2852_v35  ;;  %v198_v22 = vmul.f32 %v2491_v33, %v197_v58  ;;  %vm220_vm5 = vweird.f32 %v2495_v60 }
 0x114   :  { %v164_v4 = vmul.f32 %v2497_v63, %v2854_v36  ;;  %2498 = vrsqrt.f32 %v138_v62  ;;  %v148_v5 = vmul.f32 %v2493_v37, %v147_v61  ;;  %vm170_vm3 = vweird.f32 %v2497_v63  ;;  %vm221_vm7 = vmor %vm219_vm4, %vm220_vm5 }
 0x115   :  { %v215_v6 = vmul.f32 %v2495_v60, %v214_v0  ;;  %v202_v7 = vsel %vm201_vm11, %v2491_v33, %v198_v22  ;;  %vm171_vm6 = vmor %vm169_vm2, %vm170_vm3  ;;  %vm179_vm8 = vweird.f32 %v138_v62  ;;  %vm359_vm11 = vcmask 64512  }
 0x116   :  { %v165_v9 = vmul.f32 %v2497_v63, %v164_v4  ;;  %v152_v10 = vsel %vm2866_vm10, %v2493_v37, %v148_v5  ;;  %v228_v11 = vmul.f32 %v202_v7, %v2787_v43  ;;  %v212_v43 = vsel %vm211_vm15, %v2842_v20, %v208_v14  ;;  %v2481_v37 = vld [vmem:[%s3834_s3] ss:$0 sm:$0xff] }
 0x117   :  { %v216_v12 = vmul.f32 0.5, %v215_v6  ;;  %v223_v13 = vmul.f32 %v152_v10, %v2785_v42  ;;  %v162_v42 = vsel %vm161_vm1, %v2848_v31, %v158_v15  ;;  %v229_v8 = vmul.f32 %v212_v43, %v2769_v28 }
 0x118   :  { %v166_v16 = vmul.f32 0.5, %v165_v9  ;;  %2248 = vmatmul.msk.f32.gmra.mxu2 %vm47_vm0, %v228_v11  ;;  %v224_v24 = vmul.f32 %v162_v42, %v2783_v41  ;;  %v299_v42 = vlaneseq }
 0x119   :  { %2243 = vmatmul.msk.f32.vlgmr.msra.gmra.mxu0 %vm47_vm0, %v223_v13  ;;  %v217_v18 = vsub.f32 1.5, %v216_v12 }
 0x11a   :  { %v2499_v17 = vpop.eup %2498  ;;  %v167_v21 = vsub.f32 1.5, %v166_v16 }
 0x11b   :  { %v174_v19 = vmul.f32 %v2499_v17, %v138_v62  ;;  %v218_v25 = vmul.f32 %v2495_v60, %v217_v18  ;;  %vm180_vm9 = vweird.f32 %v2499_v17 }
 0x11c   :  { %v168_v27 = vmul.f32 %v2497_v63, %v167_v21  ;;  %vm181_vm10 = vmor %vm179_vm8, %vm180_vm9 }
 0x11d   :  { %v175_v23 = vmul.f32 %v2499_v17, %v174_v19  ;;  %v222_v20 = vsel %vm221_vm7, %v2495_v60, %v218_v25 }
 0x11e   :  { %v172_v31 = vsel %vm171_vm6, %v2497_v63, %v168_v27  ;;  %v230_v28 = vmul.f32 %v222_v20, %v2793_v46  ;;  %v2693_v27 = vmov -1e+30  }
 0x11f   :  { %v176_v26 = vmul.f32 0.5, %v175_v23  ;;  %v225_v32 = vmul.f32 %v172_v31, %v2804_v56  ;;  %v300_v23 = vshrl.u32 %v299_v42, 7 }
 0x120   :  { %2249 = vmatmul.msk.f32.gmra.mxu2 %vm47_vm0, %v229_v8  ;;  %v309_v8 = vand.u32 127, %v299_v42 }
 0x121   :  { %2244 = vmatmul.msk.f32.gmra.mxu0 %vm47_vm0, %v224_v24  ;;  %v177_v30 = vsub.f32 1.5, %v176_v26  ;;  %v310_v24 = vand.u32 15, %v300_v23  ;;  %v301_v26 = vadd.s32 8, %v300_v23 }
 0x122   :  { %v318_v25 = vand.u32 15, %v309_v8 }
 0x123   :  { %v178_v41 = vmul.f32 %v2499_v17, %v177_v30  ;;  %v311_v30 = vand.u32 15, %v301_v26 }
 0x124   :  { %vm319_vm12 = vcmp.eq.s32.totalorder %v310_v24, %v318_v25 }
 0x125   :  { %v182_v33 = vsel %vm181_vm10, %v2499_v17, %v178_v41  ;;  %v2989_v20 = vsel %vm319_vm12, 0.0, %v2693_v27  ;;  %vm320_vm14 = vcmp.eq.s32.totalorder %v311_v30, %v318_v25  ;;  %v302_v41 = vadd.s32 16, %v300_v23 }
 0x126   :  { %v226_v34 = vmul.f32 %v182_v33, %v2809_v59  ;;  %v2996_v33 = vsel %vm320_vm14, 0.0, %v2693_v27 }
 0x128   :  { %2250 = vmatmul.msk.f32.gmra.mxu2 %vm47_vm0, %v230_v28 }
 0x129   :  { %2245 = vmatmul.msk.f32.gmra.mxu0 %vm47_vm0, %v225_v32 }
 0x131   :  { %2246 = vmatmul.msk.f32.gmra.mxu0 %vm47_vm0, %v226_v34  ;;  %v312_v34 = vand.u32 15, %v302_v41 }
 0x133   :  { %vm321_vm15 = vcmp.eq.s32.totalorder %v312_v34, %v318_v25 }
 0x193   :  { %v287_v35 = vpop.f32.mrf.mxu2 }
 0x194   :  { %v2910_v47 = vadd.f32 %v2481_v37, %v287_v35 }
 0x196   :  { %v275_v36 = vpop.f32.mrf.mxu0 }
 0x197   :  { %v2924_v52 = vadd.f32 %v2481_v37, %v275_v36 }
 0x19b   :  { %v290_v46 = vpop.f32.mrf.mxu2 }
 0x19c   :  { %v2901_v38 = vadd.f32 %v2481_v37, %v290_v46  ;;  %v3000_v46 = vsel %vm321_vm15, 0.0, %v2693_v27 }
 0x19e   :  { %v278_v56 = vpop.f32.mrf.mxu0  ;;  %353 = vrot.lane.b32.xlu0 %v2901_v38, %s2688_s22  ;;  %v2939_v55 = vpack.i.bf16 %v2910_v47, %v2901_v38 }
 0x19f   :  { %v2917_v50 = vadd.f32 %v2481_v37, %v278_v56 }
 0x1a1   :  { %v2946_v57 = vpack.i.bf16 %v2924_v52, %v2917_v50 }
 0x1a3   :  { %v293_v39 = vpop.f32.mrf.mxu2 }
 0x1a4   :  { %v2904_v40 = vadd.f32 %v2481_v37, %v293_v39 }
 0x1a6   :  { %v281_v44 = vpop.f32.mrf.mxu0  ;;  %355 = vrot.lane.b32.xlu2 %v2904_v40, %s2688_s22 }
 0x1a7   :  { %v2907_v59 = vadd.f32 %v2481_v37, %v281_v44 }
 0x1a9   :  { %347 = vrot.lane.b32.xlu0 %v2907_v59, %s2688_s22 }
 0x1ab   :  { %v296_v45 = vpop.f32.mrf.mxu2 }
 0x1ac   :  { %v2912_v48 = vadd.f32 %v2481_v37, %v296_v45  ;;  %v304_v45 = vadd.s32 32, %v300_v23 }
 0x1ae   :  { %357 = vrot.lane.b32.xlu1 %v2912_v48, %s2688_s22  ;;  %351 = vrot.lane.b32.xlu2 %v2910_v47, %s2688_s22  ;;  %v284_v49 = vpop.f32.mrf.mxu0  ;;  %v2934_v54 = vpack.i.bf16 %v2904_v40, %v2912_v48 }
 0x1af   :  { %v2919_v51 = vadd.f32 %v2481_v37, %v284_v49  ;;  %v314_v49 = vand.u32 15, %v304_v45 }
 0x1b1   :  { %739 = vrot.lane.b32.xlu0 %v2910_v47, %s2689_s23  ;;  %v2928_v53 = vpack.i.bf16 %v2907_v59, %v2919_v51  ;;  %vm323_vm1 = vcmp.eq.s32.totalorder %v314_v49, %v318_v25 }
 0x1b6   :  { %349 = vrot.lane.b32.xlu1 %v2919_v51, %s2688_s22  ;;  %345 = vrot.lane.b32.xlu2 %v2917_v50, %s2688_s22 }
 0x1b9   :  { %735 = vrot.lane.b32.xlu0 %v2907_v59, %s2689_s23 }
 0x1be   :  { %2407 = vrot.lane.b32.xlu2 %v2928_v53, %s2690_s24  ;;  %343 = vrot.lane.b32.xlu1 %v2924_v52, %s2688_s22 }
 0x1c1   :  { %2417 = vrot.lane.b32.xlu0 %v2934_v54, %s2690_s24 }
 0x1c6   :  { %741 = vrot.lane.b32.xlu2 %v2901_v38, %s2689_s23  ;;  %2402 = vrot.lane.b32.xlu1 %v2939_v55, %s2690_s24 }
 0x1c9   :  { %745 = vrot.lane.b32.xlu0 %v2912_v48, %s2689_s23 }
 0x1ce   :  { %733 = vrot.lane.b32.xlu2 %v2917_v50, %s2689_s23  ;;  %2412 = vrot.lane.b32.xlu1 %v2946_v57, %s2690_s24 }
 0x1d6   :  { %743 = vrot.lane.b32.xlu1 %v2904_v40, %s2689_s23  ;;  %1171 = vrot.lane.b32.xlu2 %v2827_v2, %s2692_s1 }
 0x1de   :  { %737 = vrot.lane.b32.xlu1 %v2919_v51, %s2689_s23 }
 0x1e6   :  { %731 = vrot.lane.b32.xlu1 %v2924_v52, %s2689_s23 }
 0x1ee   :  { %717 = vrot.lane.b32.xlu1 %v2917_v50, %s2691_s25 }
 0x200   :  { %v356_v61 = vpop.permute.xlu2 %355 }
 0x208   :  { %v352_v29 = vpop.permute.xlu2 %351 }
 0x210   :  { %v354_v58 = vpop.permute.xlu0 %353  ;;  %v346_v22 = vpop.permute.xlu2 %345 }
 0x218   :  { %v2408_v9 = vpop.permute.xlu2 %2407 }
 0x219   :  { %v2409_v12 = vunpack.i.l.bf16 %v2408_v9  ;;  %v2410_v13 = vunpack.i.h.bf16 %v2408_v9 }
 0x21b   :  { %v348_v60 = vpop.permute.xlu0 %347 }
 0x220   :  { %v358_v62 = vpop.permute.xlu1 %357  ;;  %v742_v18 = vpop.permute.xlu2 %741 }
 0x221   :  { %2251 = vmatpush.xpose.msk.msra.mxu1 %vm359_vm11, %v358_v62  ;;  %v3006_v62 = vsel %vm323_vm1, 0.0, %v2693_v27 }
 0x223   :  { %v740_v63 = vpop.permute.xlu0 %739 }
 0x225   :  { %2252 = vmatpush.xpose.msk.msra.mxu1 %vm359_vm11, %v356_v61 }
 0x228   :  { %v350_v0 = vpop.permute.xlu1 %349  ;;  %v734_v43 = vpop.permute.xlu2 %733 }
 0x229   :  { %2253 = vmatpush.xpose.msk.msra.mxu1 %vm359_vm11, %v354_v58 }
 0x22b   :  { %v736_v1 = vpop.permute.xlu0 %735 }
 0x22d   :  { %2254 = vmatpush.xpose.msk.msra.mxu1 %vm359_vm11, %v352_v29 }
 0x230   :  { %v344_v3 = vpop.permute.xlu1 %343  ;;  %v1172_v61 = vpop.permute.xlu2 %1171 }
 0x231   :  { %2255 = vmatpush.xpose.msk.msra.mxu1 %vm359_vm11, %v350_v0 }
 0x233   :  { %v2418_v2 = vpop.permute.xlu0 %2417 }
 0x234   :  { %v2419_v4 = vunpack.i.l.bf16 %v2418_v2  ;;  %v2420_v5 = vunpack.i.h.bf16 %v2418_v2 }
 0x235   :  { %2256 = vmatpush.xpose.msk.msra.mxu1 %vm359_vm11, %v348_v60  ;;  %v305_v60 = vadd.s32 40, %v300_v23 }
 0x236   :  { %682 = vmatpush.msrb.mxu2 %v2419_v4 }
 0x238   :  { %683 = vmatpush.msrb.mxu2 %v2420_v5  ;;  %v2403_v6 = vpop.permute.xlu1 %2402  ;;  %v307_v5 = vadd.s32 56, %v300_v23 }
 0x239   :  { %2257 = vmatpush.xpose.msk.msra.mxu1 %vm359_vm11, %v346_v22  ;;  %v2404_v7 = vunpack.i.l.bf16 %v2403_v6  ;;  %v2405_v11 = vunpack.i.h.bf16 %v2403_v6  ;;  %v303_v6 = vadd.s32 24, %v300_v23 }
 0x23b   :  { %v746_v10 = vpop.permute.xlu0 %745  ;;  %684 = vmatpush.msrb.mxu2 %v2404_v7  ;;  %v317_v7 = vand.u32 15, %v307_v5 }
 0x23c   :  { %2275 = vmatpush.xpose.msk.msra.mxu3 %vm359_vm11, %v746_v10  ;;  %v313_v10 = vand.u32 15, %v303_v6 }
 0x23d   :  { %2258 = vmatpush.xpose.msk.msra.mxu1 %vm359_vm11, %v344_v3  ;;  %685 = vmatpush.msrb.mxu2 %v2405_v11  ;;  %vm326_vm3 = vcmp.eq.s32.totalorder %v317_v7, %v318_v25 }
 0x23e   :  { %v3017_v11 = vsel %vm326_vm3, 0.0, %v2693_v27  ;;  %vm322_vm4 = vcmp.eq.s32.totalorder %v313_v10, %v318_v25 }
 0x23f   :  { %686 = vmatpush.msrb.mxu2 %v2409_v12  ;;  %v306_v12 = vadd.s32 48, %v300_v23 }
 0x240   :  { %2259 = vmatmul.msk.f32.vlgmr.msra.gmra.mxu1 %vm359_vm11, %v2924_v52  ;;  %v2413_v14 = vpop.permute.xlu1 %2412 }
 0x241   :  { %687 = vmatpush.msrb.mxu2 %v2410_v13  ;;  %v2414_v16 = vunpack.i.l.bf16 %v2413_v14  ;;  %v2415_v15 = vunpack.i.h.bf16 %v2413_v14  ;;  %1213 = vmatpush.msrb.mxu1 %v1172_v61 }
 0x243   :  { %688 = vmatpush.msrb.mxu2 %v2414_v16  ;;  %v3022_v16 = vsel %vm322_vm4, 0.0, %v2693_v27 }
 0x245   :  { %689 = vmatpush.msrb.mxu2 %v2415_v15  ;;  %v316_v15 = vand.u32 15, %v306_v12 }
 0x247   :  { %vm325_vm5 = vcmp.eq.s32.totalorder %v316_v15, %v318_v25 }
 0x248   :  { %2260 = vmatmul.msk.f32.gmra.mxu1 %vm359_vm11, %v2917_v50  ;;  %v744_v17 = vpop.permute.xlu1 %743 }
 0x249   :  { %2276 = vmatpush.xpose.msk.msra.mxu3 %vm359_vm11, %v744_v17 }
 0x24d   :  { %2277 = vmatpush.xpose.msk.msra.mxu3 %vm359_vm11, %v742_v18 }
 0x250   :  { %2261 = vmatmul.msk.f32.gmra.mxu1 %vm359_vm11, %v2907_v59  ;;  %v738_v19 = vpop.permute.xlu1 %737 }
 0x251   :  { %2278 = vmatpush.xpose.msk.msra.mxu3 %vm359_vm11, %v740_v63  ;;  %v315_v63 = vand.u32 15, %v305_v60 }
 0x253   :  { %vm324_vm2 = vcmp.eq.s32.totalorder %v315_v63, %v318_v25 }
 0x254   :  { %v3010_v22 = vsel %vm324_vm2, 0.0, %v2693_v27 }
 0x255   :  { %2279 = vmatpush.xpose.msk.msra.mxu3 %vm359_vm11, %v738_v19 }
 0x258   :  { %2262 = vmatmul.msk.f32.gmra.mxu1 %vm359_vm11, %v2919_v51  ;;  %v732_v21 = vpop.permute.xlu1 %731 }
 0x259   :  { %2280 = vmatpush.xpose.msk.msra.mxu3 %vm359_vm11, %v736_v1 }
 0x25d   :  { %2281 = vmatpush.xpose.msk.msra.mxu3 %vm359_vm11, %v734_v43  ;;  %v3028_v43 = vsel %vm325_vm5, 0.0, %v2693_v27 }
 0x260   :  { %2263 = vmatmul.msk.f32.gmra.mxu1 %vm359_vm11, %v2910_v47  ;;  %v718_v26 = vpop.permute.xlu1 %717 }
 0x261   :  { %2282 = vmatpush.xpose.msk.msra.mxu3 %vm359_vm11, %v732_v21 }
 0x268   :  { %2264 = vmatmul.msk.f32.gmra.mxu1 %vm359_vm11, %v2901_v38 }
 0x270   :  { %2265 = vmatmul.msk.f32.gmra.mxu1 %vm359_vm11, %v2904_v40 }
 0x278   :  { %2266 = vmatmul.msk.f32.gmra.mxu1 %vm359_vm11, %v2912_v48 }
 0x2bd   :  { %v409_v31 = vpop.f32.mrf.mxu1 }
 0x2be   :  { %v2992_v28 = vadd.f32 %v409_v31, %v2989_v20 }
 0x2c0   :  { %v434_v32 = vsel %vm433_vm13, %v2992_v28, -inf }
 0x2c1   :  { %435 = vmax.xlane.f32.xlu0 %v434_v32 }
 0x2c5   :  { %v412_v35 = vpop.f32.mrf.mxu1 }
 0x2c6   :  { %v413_v36 = vadd.f32 %v412_v35, %v2996_v33 }
 0x2c8   :  { %v437_v37 = vsel %vm433_vm13, %v413_v36, -inf }
 0x2c9   :  { %438 = vmax.xlane.f32.xlu2 %v437_v37 }
 0x2cd   :  { %v415_v56 = vpop.f32.mrf.mxu1 }
 0x2ce   :  { %v416_v39 = vadd.f32 %v415_v56, %v3000_v46 }
 0x2d0   :  { %v440_v44 = vsel %vm433_vm13, %v416_v39, -inf }
 0x2d1   :  { %441 = vmax.xlane.f32.xlu1 %v440_v44 }
 0x2d5   :  { %v418_v58 = vpop.f32.mrf.mxu1  ;;  %715 = vrot.lane.b32.xlu0 %v2924_v52, %s2691_s25 }
 0x2d6   :  { %v419_v18 = vadd.f32 %v418_v58, %v3022_v16 }
 0x2d8   :  { %v443_v19 = vsel %vm433_vm13, %v419_v18, -inf }
 0x2dd   :  { %v421_v29 = vpop.f32.mrf.mxu1 }
 0x2de   :  { %v422_v0 = vadd.f32 %v421_v29, %v3006_v62 }
 0x2e0   :  { %v446_v1 = vsel %vm433_vm13, %v422_v0, -inf }
 0x2e1   :  { %447 = vmax.xlane.f32.xlu2 %v446_v1 }
 0x2e5   :  { %v424_v3 = vpop.f32.mrf.mxu1 }
 0x2e6   :  { %v3013_v2 = vadd.f32 %v424_v3, %v3010_v22 }
 0x2e8   :  { %v449_v4 = vsel %vm433_vm13, %v3013_v2, -inf }
 0x2e9   :  { %450 = vmax.xlane.f32.xlu1 %v449_v4 }
 0x2ed   :  { %v427_v9 = vpop.f32.mrf.mxu1 }
 0x2ee   :  { %v428_v21 = vadd.f32 %v427_v9, %v3028_v43 }
 0x2f0   :  { %v452_v42 = vsel %vm433_vm13, %v428_v21, -inf }
 0x2f5   :  { %v430_v13 = vpop.f32.mrf.mxu1 }
 0x2f6   :  { %v3020_v14 = vadd.f32 %v430_v13, %v3017_v11 }
 0x2f8   :  { %v455_v17 = vsel %vm433_vm13, %v3020_v14, -inf }
 0x2f9   :  { %456 = vmax.xlane.f32.xlu1 %v455_v17 }
 0x2ff   :  { %444 = vmax.xlane.f32.xlu0 %v443_v19 }
 0x307   :  { %453 = vmax.xlane.f32.xlu0 %v452_v42 }
 0x312   :  { %723 = vrot.lane.b32.xlu1 %v2910_v47, %s2691_s25 }
 0x334   :  { %v436_v23 = vpop.xlane.xlu0 %435 }
 0x335   :  { %v458_v8 = vsub.f32 %v2992_v28, %v436_v23 }
 0x337   :  { %v466_v24 = vmul.f32 1.442695, %v458_v8 }
 0x339   :  { %2500 = vpow2.f32 %v466_v24 }
 0x33c   :  { %v439_v25 = vpop.xlane.xlu2 %438 }
 0x33d   :  { %v459_v30 = vsub.f32 %v413_v36, %v439_v25 }
 0x33f   :  { %v3035_v31 = vpop.eup %2500  ;;  %v468_v27 = vmul.f32 1.442695, %v459_v30 }
 0x340   :  { %v482_v32 = vsel %vm433_vm13, %v3035_v31, 0.0 }
 0x341   :  { %2502 = vpow2.f32 %v468_v27  ;;  %483 = vadd.xlane.f32.xlu2 %v482_v32 }
 0x344   :  { %v442_v41 = vpop.xlane.xlu1 %441 }
 0x345   :  { %v460_v34 = vsub.f32 %v416_v39, %v442_v41 }
 0x347   :  { %v3039_v35 = vpop.eup %2502  ;;  %v470_v37 = vmul.f32 1.442695, %v460_v34  ;;  %v716_v56 = vpop.permute.xlu0 %715 }
 0x348   :  { %2283 = vmatmul.msk.f32.vlgmr.msra.gmra.mxu3 %vm359_vm11, %v716_v56  ;;  %v485_v28 = vsel %vm433_vm13, %v3039_v35, 0.0 }
 0x349   :  { %2504 = vpow2.f32 %v470_v37  ;;  %486 = vadd.xlane.f32.xlu2 %v485_v28 }
 0x34f   :  { %v3044_v36 = vpop.eup %2504 }
 0x350   :  { %2284 = vmatmul.msk.f32.gmra.mxu3 %vm359_vm11, %v718_v26  ;;  %v488_v44 = vsel %vm433_vm13, %v3044_v36, 0.0 }
 0x351   :  { %489 = vadd.xlane.f32.xlu0 %v488_v44 }
 0x354   :  { %v448_v39 = vpop.xlane.xlu2 %447 }
 0x355   :  { %v462_v45 = vsub.f32 %v422_v0, %v448_v39 }
 0x357   :  { %v474_v49 = vmul.f32 1.442695, %v462_v45 }
 0x359   :  { %2506 = vpow2.f32 %v474_v49 }
 0x35c   :  { %v451_v29 = vpop.xlane.xlu1 %450 }
 0x35d   :  { %v463_v1 = vsub.f32 %v3013_v2, %v451_v29 }
 0x35f   :  { %v3049_v58 = vpop.eup %2506  ;;  %v476_v3 = vmul.f32 1.442695, %v463_v1 }
 0x360   :  { %v494_v60 = vsel %vm433_vm13, %v3049_v58, 0.0 }
 0x361   :  { %495 = vadd.xlane.f32.xlu1 %v494_v60  ;;  %721 = vrot.lane.b32.xlu2 %v2919_v51, %s2691_s25 }
 0x365   :  { %719 = vrot.lane.b32.xlu0 %v2907_v59, %s2691_s25 }
 0x372   :  { %v445_v61 = vpop.xlane.xlu0 %444 }
 0x373   :  { %v461_v63 = vsub.f32 %v419_v18, %v445_v61 }
 0x375   :  { %v472_v0 = vmul.f32 1.442695, %v461_v63 }
 0x377   :  { %2508 = vpow2.f32 %v472_v0 }
 0x378   :  { %2510 = vpow2.f32 %v476_v3 }
 0x37a   :  { %725 = vrot.lane.b32.xlu1 %v2901_v38, %s2691_s25  ;;  %v454_v4 = vpop.xlane.xlu0 %453 }
 0x37b   :  { %v464_v5 = vsub.f32 %v428_v21, %v454_v4 }
 0x37d   :  { %v3062_v6 = vpop.eup %2508  ;;  %v478_v7 = vmul.f32 1.442695, %v464_v5 }
 0x37e   :  { %v491_v9 = vsel %vm433_vm13, %v3062_v6, 0.0  ;;  %v3068_v2 = vpop.eup %2510 }
 0x37f   :  { %2512 = vpow2.f32 %v478_v7  ;;  %v497_v10 = vsel %vm433_vm13, %v3068_v2, 0.0 }
 0x382   :  { %1263 = vrot.lane.b32.xlu1 %v2910_v47, %s2694_s26 }
 0x385   :  { %v3074_v12 = vpop.eup %2512 }
 0x386   :  { %v500_v13 = vsel %vm433_vm13, %v3074_v12, 0.0 }
 0x38a   :  { %1261 = vrot.lane.b32.xlu1 %v2919_v51, %s2694_s26  ;;  %492 = vadd.xlane.f32.xlu2 %v491_v9  ;;  %v457_v9 = vpop.xlane.xlu1 %456 }
 0x38f   :  { %498 = vadd.xlane.f32.xlu0 %v497_v10 }
 0x392   :  { %1726 = vrot.lane.b32.xlu1 %v2910_v47, %s2695_s27 }
 0x397   :  { %501 = vadd.xlane.f32.xlu0 %v500_v13  ;;  %v724_v13 = vpop.permute.xlu1 %723 }
 0x39a   :  { %1724 = vrot.lane.b32.xlu1 %v2919_v51, %s2695_s27 }
 0x3a2   :  { %1239 = vrot.lane.b32.xlu1 %v2924_v52, %s2696_s28  ;;  %1267 = vrot.lane.b32.xlu2 %v2904_v40, %s2694_s26 }
 0x3aa   :  { %1241 = vrot.lane.b32.xlu1 %v2917_v50, %s2696_s28  ;;  %1732 = vrot.lane.b32.xlu2 %v2912_v48, %s2695_s27 }
 0x3ab   :  { %1269 = vrot.lane.b32.xlu0 %v2912_v48, %s2694_s26 }
 0x3b2   :  { %1704 = vrot.lane.b32.xlu1 %v2917_v50, %s2697_s29  ;;  %727 = vrot.lane.b32.xlu2 %v2904_v40, %s2691_s25 }
 0x3b3   :  { %1265 = vrot.lane.b32.xlu0 %v2901_v38, %s2694_s26 }
 0x3b4   :  { %v484_v15 = vpop.xlane.xlu2 %483 }
 0x3b5   :  { %2514 = vrcp.f32 %v484_v15  ;;  %v517_v42 = vand.u32 2147483648, %v484_v15  ;;  %v515_v8 = vand.u32 2147483647, %v484_v15  ;;  %vm511_vm7 = vweird.f32 %v484_v15 }
 0x3b7   :  { %v518_v25 = vor.u32 1.1754944e-38, %v517_v42  ;;  %vm516_vm9 = vcmp.eq.f32.partialorder %v515_v8, 8.507059e+37 }
 0x3ba   :  { %1247 = vrot.lane.b32.xlu1 %v2910_v47, %s2696_s28  ;;  %1259 = vrot.lane.b32.xlu2 %v2907_v59, %s2694_s26 }
 0x3bb   :  { %v2515_v17 = vpop.eup %2514  ;;  %1730 = vrot.lane.b32.xlu0 %v2904_v40, %s2695_s27 }
 0x3bc   :  { %v507_v18 = vmul.f32 %v2515_v17, %v484_v15  ;;  %v487_v19 = vpop.xlane.xlu2 %486  ;;  %vm512_vm6 = vweird.f32 %v2515_v17 }
 0x3bd   :  { %2516 = vrcp.f32 %v487_v19  ;;  %vm513_vm8 = vmor %vm511_vm7, %vm512_vm6  ;;  %v531_v56 = vand.u32 2147483648, %v487_v19  ;;  %v529_v28 = vand.u32 2147483647, %v487_v19  ;;  %vm525_vm12 = vweird.f32 %v487_v19 }
 0x3be   :  { %v508_v21 = vsub.f32 1.0, %v507_v18 }
 0x3bf   :  { %v532_v45 = vor.u32 1.1754944e-38, %v531_v56  ;;  %vm530_vm15 = vcmp.eq.f32.partialorder %v529_v28, 8.507059e+37 }
 0x3c0   :  { %v509_v23 = vmul.f32 %v2515_v17, %v508_v21 }
 0x3c2   :  { %v510_v24 = vadd.f32 %v2515_v17, %v509_v23  ;;  %1710 = vrot.lane.b32.xlu1 %v2910_v47, %s2697_s29  ;;  %1257 = vrot.lane.b32.xlu2 %v2917_v50, %s2694_s26 }
 0x3c3   :  { %v2517_v26 = vpop.eup %2516  ;;  %1728 = vrot.lane.b32.xlu0 %v2901_v38, %s2695_s27 }
 0x3c4   :  { %v521_v30 = vmul.f32 %v2517_v26, %v487_v19  ;;  %v490_v27 = vpop.xlane.xlu0 %489  ;;  %v514_v32 = vsel %vm513_vm8, %v2515_v17, %v510_v24  ;;  %vm526_vm10 = vweird.f32 %v2517_v26  ;;  %v722_v15 = vpop.permute.xlu2 %721 }
 0x3c5   :  { %2518 = vrcp.f32 %v490_v27  ;;  %v519_v41 = vsel %vm516_vm9, %v518_v25, %v514_v32  ;;  %vm527_vm14 = vmor %vm525_vm12, %vm526_vm10  ;;  %v545_v29 = vand.u32 2147483648, %v490_v27  ;;  %v543_v1 = vand.u32 2147483647, %v490_v27 }
 0x3c6   :  { %v522_v34 = vsub.f32 1.0, %v521_v30  ;;  %v618_v37 = vmul.f32 %v3035_v31, %v519_v41  ;;  %vm539_vm2 = vweird.f32 %v490_v27  ;;  %v465_v25 = vsub.f32 %v3020_v14, %v457_v9 }
 0x3c7   :  { %v546_v4 = vor.u32 1.1754944e-38, %v545_v29  ;;  %vm544_vm4 = vcmp.eq.f32.partialorder %v543_v1, 8.507059e+37 }
 0x3c8   :  { %v523_v47 = vmul.f32 %v2517_v26, %v522_v34  ;;  %2267 = vmatmul.msk.f32.vlgmr.msrb.gmra.mxu2 %vm433_vm13, %v618_v37 }
 0x3ca   :  { %1253 = vrot.lane.b32.xlu1 %v2912_v48, %s2696_s28  ;;  %1722 = vrot.lane.b32.xlu2 %v2907_v59, %s2695_s27  ;;  %v524_v44 = vadd.f32 %v2517_v26, %v523_v47  ;;  %v480_v47 = vmul.f32 1.442695, %v465_v25 }
 0x3cb   :  { %v2519_v39 = vpop.eup %2518  ;;  %729 = vrot.lane.b32.xlu0 %v2912_v48, %s2691_s25 }
 0x3cc   :  { %v535_v31 = vmul.f32 %v2519_v39, %v490_v27  ;;  %v528_v49 = vsel %vm527_vm14, %v2517_v26, %v524_v44  ;;  %vm540_vm1 = vweird.f32 %v2519_v39 }
 0x3cd   :  { %v533_v60 = vsel %vm530_vm15, %v532_v45, %v528_v49  ;;  %vm541_vm3 = vmor %vm539_vm2, %vm540_vm1 }
 0x3ce   :  { %v536_v61 = vsub.f32 1.0, %v535_v31  ;;  %v619_v63 = vmul.f32 %v3039_v35, %v533_v60 }
 0x3d0   :  { %v537_v0 = vmul.f32 %v2519_v39, %v536_v61  ;;  %2268 = vmatmul.msk.f32.gmra.mxu2 %vm433_vm13, %v619_v63 }
 0x3d2   :  { %1718 = vrot.lane.b32.xlu2 %v2924_v52, %s2695_s27  ;;  %v538_v3 = vadd.f32 %v2519_v39, %v537_v0 }
 0x3d3   :  { %1255 = vrot.lane.b32.xlu0 %v2924_v52, %s2694_s26 }
 0x3d4   :  { %v542_v5 = vsel %vm541_vm3, %v2519_v39, %v538_v3 }
 0x3d5   :  { %v547_v7 = vsel %vm544_vm4, %v546_v4, %v542_v5 }
 0x3d6   :  { %v620_v35 = vmul.f32 %v3044_v36, %v547_v7  ;;  %v3134_v36 = vpop.xlane.xlu1 %495 }
 0x3d7   :  { %v720_v10 = vpop.permute.xlu0 %719  ;;  %2520 = vrcp.f32 %v3134_v36  ;;  %v573_v31 = vand.u32 2147483648, %v3134_v36  ;;  %vm567_vm10 = vweird.f32 %v3134_v36  ;;  %v571_v63 = vand.u32 2147483647, %v3134_v36 }
 0x3d8   :  { %2269 = vmatmul.msk.f32.gmra.mxu2 %vm433_vm13, %v620_v35  ;;  %2285 = vmatmul.msk.f32.gmra.mxu3 %vm359_vm11, %v720_v10 }
 0x3d9   :  { %v574_v3 = vor.u32 1.1754944e-38, %v573_v31  ;;  %vm572_vm14 = vcmp.eq.f32.partialorder %v571_v63, 8.507059e+37 }
 0x3da   :  { %1243 = vrot.lane.b32.xlu2 %v2907_v59, %s2696_s28 }
 0x3db   :  { %1720 = vrot.lane.b32.xlu0 %v2917_v50, %s2695_s27  ;;  %v796_v50 = vpop.f32.mrf.mxu3 }
 0x3dc   :  { %v3142_v17 = vadd.f32 %v796_v50, %v2989_v20 }
 0x3dd   :  { %v2521_v19 = vpop.eup %2520 }
 0x3de   :  { %v563_v21 = vmul.f32 %v2521_v19, %v3134_v36  ;;  %vm568_vm8 = vweird.f32 %v2521_v19 }
 0x3df   :  { %vm569_vm12 = vmor %vm567_vm10, %vm568_vm8 }
 0x3e0   :  { %2286 = vmatmul.msk.f32.gmra.mxu3 %vm359_vm11, %v722_v15 }
 0x3e2   :  { %1706 = vrot.lane.b32.xlu2 %v2907_v59, %s2697_s29  ;;  %v820_v59 = vsel %vm433_vm13, %v3142_v17, -inf }
 0x3e3   :  { %1702 = vrot.lane.b32.xlu0 %v2924_v52, %s2697_s29 }
 0x3e8   :  { %2287 = vmatmul.msk.f32.gmra.mxu3 %vm359_vm11, %v724_v13 }
 0x3ea   :  { %1249 = vrot.lane.b32.xlu2 %v2901_v38, %s2696_s28 }
 0x3eb   :  { %1245 = vrot.lane.b32.xlu0 %v2919_v51, %s2696_s28 }
 0x3ec   :  { %v726_v18 = vpop.permute.xlu1 %725 }
 0x3f0   :  { %2288 = vmatmul.msk.f32.gmra.mxu3 %vm359_vm11, %v726_v18 }
 0x3f2   :  { %1712 = vrot.lane.b32.xlu2 %v2901_v38, %s2697_s29 }
 0x3f3   :  { %1708 = vrot.lane.b32.xlu0 %v2919_v51, %s2697_s29  ;;  %v564_v51 = vsub.f32 1.0, %v563_v21 }
 0x3f4   :  { %821 = vmax.xlane.f32.xlu1 %v820_v59  ;;  %v3160_v23 = vpop.permute.xlu1 %1263 }
 0x3f5   :  { %v565_v32 = vmul.f32 %v2521_v19, %v564_v51 }
 0x3f7   :  { %v566_v45 = vadd.f32 %v2521_v19, %v565_v32 }
 0x3f9   :  { %v570_v1 = vsel %vm569_vm12, %v2521_v19, %v566_v45 }
 0x3fa   :  { %v575_v5 = vsel %vm572_vm14, %v574_v3, %v570_v1 }
 0x3fb   :  { %1251 = vrot.lane.b32.xlu0 %v2904_v40, %s2696_s28  ;;  %v622_v13 = vmul.f32 %v3049_v58, %v575_v5 }
 0x3fc   :  { %v1262_v60 = vpop.permute.xlu1 %1261 }
 0x3fd   :  { %v493_v52 = vpop.xlane.xlu2 %492 }
 0x3fe   :  { %2522 = vrcp.f32 %v493_v52  ;;  %v559_v30 = vand.u32 2147483648, %v493_v52  ;;  %v557_v34 = vand.u32 2147483647, %v493_v52  ;;  %vm553_vm6 = vweird.f32 %v493_v52 }
 0x400   :  { %v560_v28 = vor.u32 1.1754944e-38, %v559_v30  ;;  %vm558_vm9 = vcmp.eq.f32.partialorder %v557_v34, 8.507059e+37 }
 0x402   :  { %v3155_v42 = vpop.xlane.xlu0 %498 }
 0x403   :  { %2524 = vrcp.f32 %v3155_v42  ;;  %1714 = vrot.lane.b32.xlu0 %v2904_v40, %s2697_s29  ;;  %vm581_vm1 = vweird.f32 %v3155_v42  ;;  %v585_v15 = vand.u32 2147483647, %v3155_v42 }
 0x404   :  { %v2523_v38 = vpop.eup %2522  ;;  %v1727_v36 = vpop.permute.xlu1 %1726 }
 0x405   :  { %v549_v8 = vmul.f32 %v2523_v38, %v493_v52  ;;  %v3162_v24 = vpop.permute.xlu2 %1267  ;;  %vm554_vm5 = vweird.f32 %v2523_v38  ;;  %vm586_vm3 = vcmp.eq.f32.partialorder %v585_v15, 8.507059e+37 }
 0x406   :  { %vm555_vm7 = vmor %vm553_vm6, %vm554_vm5 }
 0x407   :  { %v550_v26 = vsub.f32 1.0, %v549_v8 }
 0x409   :  { %v2525_v27 = vpop.eup %2524  ;;  %v551_v41 = vmul.f32 %v2523_v38, %v550_v26 }
 0x40a   :  { %v577_v37 = vmul.f32 %v2525_v27, %v3155_v42  ;;  %v3166_v56 = vpop.xlane.xlu0 %501  ;;  %vm582_vm15 = vweird.f32 %v2525_v27 }
 0x40b   :  { %2526 = vrcp.f32 %v3166_v56  ;;  %v552_v40 = vadd.f32 %v2523_v38, %v551_v41  ;;  %vm583_vm2 = vmor %vm581_vm1, %vm582_vm15  ;;  %v601_v58 = vand.u32 2147483648, %v3166_v56  ;;  %vm595_vm5 = vweird.f32 %v3166_v56 }
 0x40c   :  { %v578_v44 = vsub.f32 1.0, %v577_v37  ;;  %2528 = vpow2.f32 %v480_v47  ;;  %v599_v51 = vand.u32 2147483647, %v3166_v56  ;;  %v1725_v25 = vpop.permute.xlu1 %1724 }
 0x40d   :  { %v1733_v14 = vpop.permute.xlu2 %1732  ;;  %v556_v39 = vsel %vm555_vm7, %v2523_v38, %v552_v40  ;;  %v602_v26 = vor.u32 1.1754944e-38, %v601_v58 }
 0x40e   :  { %2347 = vmatpush.xpose.msk.msra.mxu1 %vm359_vm11, %v1733_v14  ;;  %v561_v49 = vsel %vm558_vm9, %v560_v28, %v556_v39  ;;  %v579_v0 = vmul.f32 %v2525_v27, %v578_v44  ;;  %vm600_vm7 = vcmp.eq.f32.partialorder %v599_v51, 8.507059e+37 }
 0x40f   :  { %v621_v61 = vmul.f32 %v3062_v6, %v561_v49  ;;  %v587_v6 = vand.u32 2147483648, %v3155_v42 }
 0x410   :  { %v580_v9 = vadd.f32 %v2525_v27, %v579_v0 }
 0x411   :  { %v2527_v29 = vpop.eup %2526  ;;  %2270 = vmatmul.msk.f32.gmra.mxu2 %vm433_vm13, %v621_v61  ;;  %v588_v59 = vor.u32 1.1754944e-38, %v587_v6 }
 0x412   :  { %v591_v4 = vmul.f32 %v2527_v29, %v3166_v56  ;;  %v3178_v10 = vpop.eup %2528  ;;  %v584_v18 = vsel %vm583_vm2, %v2525_v27, %v580_v9  ;;  %vm596_vm4 = vweird.f32 %v2527_v29  ;;  %v799_v27 = vpop.f32.mrf.mxu3 }
 0x413   :  { %v503_v52 = vsel %vm433_vm13, %v3178_v10, 0.0  ;;  %v589_v19 = vsel %vm586_vm3, %v588_v59, %v584_v18  ;;  %vm597_vm6 = vmor %vm595_vm5, %vm596_vm4 }
 0x414   :  { %v592_v7 = vsub.f32 1.0, %v591_v4  ;;  %v623_v42 = vmul.f32 %v3068_v2, %v589_v19  ;;  %v3197_v2 = vadd.f32 %v799_v27, %v2996_v33  ;;  %v1240_v37 = vpop.permute.xlu1 %1239 }
 0x415   :  { %v728_v35 = vpop.permute.xlu2 %727 }
 0x416   :  { %2289 = vmatmul.msk.f32.gmra.mxu3 %vm359_vm11, %v728_v35  ;;  %v593_v50 = vmul.f32 %v2527_v29, %v592_v7 }
 0x418   :  { %v594_v38 = vadd.f32 %v2527_v29, %v593_v50 }
 0x419   :  { %2271 = vmatmul.msk.f32.gmra.mxu2 %vm433_vm13, %v622_v13 }
 0x41a   :  { %v598_v8 = vsel %vm597_vm6, %v2527_v29, %v594_v38 }
 0x41b   :  { %504 = vadd.xlane.f32.xlu2 %v503_v52  ;;  %v603_v30 = vsel %vm600_vm7, %v602_v26, %v598_v8 }
 0x41c   :  { %v624_v41 = vmul.f32 %v3074_v12, %v603_v30 }
 0x41d   :  { %v1270_v21 = vpop.permute.xlu0 %1269  ;;  %v1260_v34 = vpop.permute.xlu2 %1259 }
 0x41e   :  { %2315 = vmatpush.xpose.msk.msrb.mxu3 %vm359_vm11, %v1270_v21 }
 0x421   :  { %2272 = vmatmul.msk.f32.gmra.mxu2 %vm433_vm13, %v623_v42 }
 0x422   :  { %2316 = vmatpush.xpose.msk.msrb.mxu3 %vm359_vm11, %v3162_v24  ;;  %v823_v24 = vsel %vm433_vm13, %v3197_v2, -inf }
 0x425   :  { %v1266_v32 = vpop.permute.xlu0 %1265  ;;  %v1258_v12 = vpop.permute.xlu2 %1257 }
 0x426   :  { %2317 = vmatpush.xpose.msk.msrb.mxu3 %vm359_vm11, %v1266_v32 }
 0x429   :  { %2273 = vmatmul.msk.f32.gmra.mxu2 %vm433_vm13, %v624_v41 }
 0x42a   :  { %2318 = vmatpush.xpose.msk.msrb.mxu3 %vm359_vm11, %v3160_v23  ;;  %v1242_v23 = vpop.permute.xlu1 %1241 }
 0x42d   :  { %824 = vmax.xlane.f32.xlu0 %v823_v24  ;;  %v1731_v56 = vpop.permute.xlu0 %1730  ;;  %v1723_v44 = vpop.permute.xlu2 %1722 }
 0x42e   :  { %2319 = vmatpush.xpose.msk.msrb.mxu3 %vm359_vm11, %v1262_v60  ;;  %2348 = vmatpush.xpose.msk.msra.mxu1 %vm359_vm11, %v1731_v56 }
 0x432   :  { %2320 = vmatpush.xpose.msk.msrb.mxu3 %vm359_vm11, %v1260_v34  ;;  %v3214_v28 = vpop.permute.xlu1 %1704 }
 0x433   :  { %1716 = vrot.lane.b32.xlu2 %v2912_v48, %s2697_s29 }
 0x435   :  { %v1729_v40 = vpop.permute.xlu0 %1728  ;;  %v1719_v31 = vpop.permute.xlu2 %1718 }
 0x436   :  { %2321 = vmatpush.xpose.msk.msrb.mxu3 %vm359_vm11, %v1258_v12  ;;  %2349 = vmatpush.xpose.msk.msra.mxu1 %vm359_vm11, %v1729_v40 }
 0x43a   :  { %2350 = vmatpush.xpose.msk.msra.mxu1 %vm359_vm11, %v1727_v36  ;;  %v1248_v14 = vpop.permute.xlu1 %1247 }
 0x43d   :  { %v730_v47 = vpop.permute.xlu0 %729  ;;  %v1244_v63 = vpop.permute.xlu2 %1243 }
 0x43e   :  { %2290 = vmatmul.msk.f32.gmra.mxu3 %vm359_vm11, %v730_v47  ;;  %2351 = vmatpush.xpose.msk.msra.mxu1 %vm359_vm11, %v1725_v25 }
 0x442   :  { %2352 = vmatpush.xpose.msk.msra.mxu1 %vm359_vm11, %v1723_v44  ;;  %v3224_v60 = vpop.permute.xlu1 %1710 }
 0x445   :  { %v1256_v48 = vpop.permute.xlu0 %1255  ;;  %v3239_v9 = vpop.permute.xlu2 %1706 }
 0x446   :  { %2322 = vmatpush.xpose.msk.msrb.mxu3 %vm359_vm11, %v1256_v48 }
 0x449   :  { %2323 = vmatmul.msk.f32.vlgmr.msrb.gmra.mxu3 %vm359_vm11, %v1240_v37 }
 0x44a   :  { %v1254_v4 = vpop.permute.xlu1 %1253 }
 0x44b   :  { %v691_v39 = vpop.f32.mrf.mxu2 }
 0x44c   :  { %2307 = vmatmul.msk.f32.vlgmr.msrb.gmra.mxu1 %vm359_vm11, %v691_v39 }
 0x44d   :  { %v1721_v45 = vpop.permute.xlu0 %1720  ;;  %v1250_v19 = vpop.permute.xlu2 %1249 }
 0x44e   :  { %2353 = vmatpush.xpose.msk.msra.mxu1 %vm359_vm11, %v1721_v45 }
 0x451   :  { %2324 = vmatmul.msk.f32.gmra.mxu3 %vm359_vm11, %v1242_v23 }
 0x452   :  { %2354 = vmatpush.xpose.msk.msra.mxu1 %vm359_vm11, %v1719_v31 }
 0x453   :  { %v694_v49 = vpop.f32.mrf.mxu2 }
 0x454   :  { %2308 = vmatmul.msk.f32.gmra.mxu1 %vm359_vm11, %v694_v49 }
 0x455   :  { %v3226_v61 = vpop.permute.xlu0 %1702  ;;  %v3264_v8 = vpop.permute.xlu2 %1712 }
 0x459   :  { %2325 = vmatmul.msk.f32.gmra.mxu3 %vm359_vm11, %v1244_v63 }
 0x45b   :  { %v697_v29 = vpop.f32.mrf.mxu2  ;;  %v802_v0 = vpop.f32.mrf.mxu3 }
 0x45c   :  { %v3230_v1 = vadd.f32 %v802_v0, %v3000_v46  ;;  %2309 = vmatmul.msk.f32.gmra.mxu1 %vm359_vm11, %v697_v29 }
 0x45d   :  { %v1246_v5 = vpop.permute.xlu0 %1245 }
 0x45e   :  { %v826_v3 = vsel %vm433_vm13, %v3230_v1, -inf }
 0x45f   :  { %827 = vmax.xlane.f32.xlu2 %v826_v3 }
 0x461   :  { %2326 = vmatmul.msk.f32.gmra.mxu3 %vm359_vm11, %v1246_v5 }
 0x463   :  { %v805_v7 = vpop.f32.mrf.mxu3 }
 0x464   :  { %v3237_v35 = vadd.f32 %v805_v7, %v3022_v16 }
 0x465   :  { %v3248_v59 = vpop.permute.xlu0 %1708 }
 0x466   :  { %v829_v6 = vsel %vm433_vm13, %v3237_v35, -inf }
 0x467   :  { %830 = vmax.xlane.f32.xlu1 %v829_v6  ;;  %v822_v13 = vpop.xlane.xlu1 %821 }
 0x468   :  { %v844_v15 = vsub.f32 %v3142_v17, %v822_v13 }
 0x469   :  { %2327 = vmatmul.msk.f32.gmra.mxu3 %vm359_vm11, %v1248_v14 }
 0x46a   :  { %v852_v36 = vmul.f32 1.442695, %v844_v15 }
 0x46b   :  { %v808_v50 = vpop.f32.mrf.mxu3 }
 0x46c   :  { %v3246_v18 = vadd.f32 %v808_v50, %v3006_v62  ;;  %2530 = vpow2.f32 %v852_v36 }
 0x46d   :  { %v1252_v51 = vpop.permute.xlu0 %1251 }
 0x46e   :  { %v832_v52 = vsel %vm433_vm13, %v3246_v18, -inf }
 0x46f   :  { %833 = vmax.xlane.f32.xlu0 %v832_v52 }
 0x471   :  { %2328 = vmatmul.msk.f32.gmra.mxu3 %vm359_vm11, %v1250_v19 }
 0x472   :  { %v3253_v21 = vpop.eup %2530 }
 0x473   :  { %v811_v17 = vpop.f32.mrf.mxu3  ;;  %v868_v42 = vsel %vm433_vm13, %v3253_v21, 0.0 }
 0x474   :  { %v3256_v38 = vadd.f32 %v811_v17, %v3010_v22 }
 0x475   :  { %v3267_v32 = vpop.permute.xlu0 %1714 }
 0x476   :  { %v835_v58 = vsel %vm433_vm13, %v3256_v38, -inf }
 0x477   :  { %836 = vmax.xlane.f32.xlu2 %v835_v58  ;;  %869 = vadd.xlane.f32.xlu0 %v868_v42 }
 0x479   :  { %2329 = vmatmul.msk.f32.gmra.mxu3 %vm359_vm11, %v1252_v51 }
 0x481   :  { %2330 = vmatmul.msk.f32.gmra.mxu3 %vm359_vm11, %v1254_v4 }
 0x48e   :  { %v505_v26 = vpop.xlane.xlu2 %504 }
 0x48f   :  { %2532 = vrcp.f32 %v505_v26  ;;  %v615_v34 = vand.u32 2147483648, %v505_v26  ;;  %v613_v12 = vand.u32 2147483647, %v505_v26  ;;  %vm609_vm9 = vweird.f32 %v505_v26 }
 0x491   :  { %v616_v44 = vor.u32 1.1754944e-38, %v615_v34  ;;  %vm614_vm12 = vcmp.eq.f32.partialorder %v613_v12, 8.507059e+37 }
 0x494   :  { %v700_v25 = vpop.f32.mrf.mxu2 }
 0x495   :  { %v2533_v30 = vpop.eup %2532  ;;  %2310 = vmatmul.msk.f32.gmra.mxu1 %vm359_vm11, %v700_v25 }
 0x496   :  { %v605_v27 = vmul.f32 %v2533_v30, %v505_v26  ;;  %vm610_vm8 = vweird.f32 %v2533_v30  ;;  %v3295_v15 = vpop.permute.xlu2 %1716 }
 0x497   :  { %vm611_vm10 = vmor %vm609_vm9, %vm610_vm8 }
 0x498   :  { %v606_v41 = vsub.f32 1.0, %v605_v27 }
 0x499   :  { %v814_v24 = vpop.f32.mrf.mxu3 }
 0x49a   :  { %v607_v37 = vmul.f32 %v2533_v30, %v606_v41  ;;  %v3270_v56 = vadd.f32 %v814_v24, %v3028_v43 }
 0x49c   :  { %v703_v40 = vpop.f32.mrf.mxu2  ;;  %v838_v23 = vsel %vm433_vm13, %v3270_v56, -inf  ;;  %v608_v47 = vadd.f32 %v2533_v30, %v607_v37 }
 0x49d   :  { %839 = vmax.xlane.f32.xlu1 %v838_v23  ;;  %2311 = vmatmul.msk.f32.gmra.mxu1 %vm359_vm11, %v703_v40 }
 0x49e   :  { %v612_v48 = vsel %vm611_vm10, %v2533_v30, %v608_v47 }
 0x49f   :  { %v617_v14 = vsel %vm614_vm12, %v616_v44, %v612_v48 }
 0x4a0   :  { %v825_v39 = vpop.xlane.xlu0 %824  ;;  %v625_v45 = vmul.f32 %v3178_v10, %v617_v14 }
 0x4a1   :  { %v845_v31 = vsub.f32 %v3197_v2, %v825_v39 }
 0x4a2   :  { %2274 = vmatmul.msk.f32.gmra.mxu2 %vm433_vm13, %v625_v45 }
 0x4a3   :  { %v854_v49 = vmul.f32 1.442695, %v845_v31 }
 0x4a4   :  { %v706_v63 = vpop.f32.mrf.mxu2 }
 0x4a5   :  { %2534 = vpow2.f32 %v854_v49  ;;  %2312 = vmatmul.msk.f32.gmra.mxu1 %vm359_vm11, %v706_v63 }
 0x4ab   :  { %v3279_v29 = vpop.eup %2534 }
 0x4ac   :  { %v709_v0 = vpop.f32.mrf.mxu2  ;;  %v871_v3 = vsel %vm433_vm13, %v3279_v29, 0.0 }
 0x4ad   :  { %872 = vadd.xlane.f32.xlu0 %v871_v3  ;;  %2313 = vmatmul.msk.f32.gmra.mxu1 %vm359_vm11, %v709_v0 }
 0x4b6   :  { %2422 = vrot.lane.b32.xlu1 %v2934_v54, %s2698_s30 }
 0x4c1   :  { %v817_v10 = vpop.f32.mrf.mxu3 }
 0x4c2   :  { %v3286_v2 = vadd.f32 %v817_v10, %v3017_v11 }
 0x4c4   :  { %v841_v4 = vsel %vm433_vm13, %v3286_v2, -inf }
 0x4c5   :  { %842 = vmax.xlane.f32.xlu2 %v841_v4 }
 0x4cc   :  { %v1320_v5 = vpop.f32.mrf.mxu3 }
 0x4cd   :  { %v3291_v7 = vadd.f32 %v1320_v5, %v2989_v20 }
 0x4cf   :  { %v1344_v6 = vsel %vm433_vm13, %v3291_v7, -inf }
 0x4d0   :  { %1345 = vmax.xlane.f32.xlu0 %v1344_v6 }
 0x4d2   :  { %v828_v19 = vpop.xlane.xlu2 %827 }
 0x4d4   :  { %v1323_v13 = vpop.f32.mrf.mxu3 }
 0x4d5   :  { %v3326_v31 = vadd.f32 %v1323_v13, %v2996_v33 }
 0x4d7   :  { %v1347_v0 = vsel %vm433_vm13, %v3326_v31, -inf }
 0x4da   :  { %v831_v12 = vpop.xlane.xlu1 %830 }
 0x4db   :  { %v847_v40 = vsub.f32 %v3237_v35, %v831_v12 }
 0x4dc   :  { %v1326_v36 = vpop.f32.mrf.mxu3 }
 0x4dd   :  { %v3298_v50 = vadd.f32 %v1326_v36, %v3000_v46  ;;  %2427 = vrot.lane.b32.xlu2 %v2939_v55, %s2698_s30  ;;  %v858_v23 = vmul.f32 1.442695, %v847_v40 }
 0x4df   :  { %v1350_v52 = vsel %vm433_vm13, %v3298_v50, -inf }
 0x4e0   :  { %1351 = vmax.xlane.f32.xlu1 %v1350_v52 }
 0x4e2   :  { %v834_v17 = vpop.xlane.xlu0 %833 }
 0x4e3   :  { %v848_v58 = vsub.f32 %v3246_v18, %v834_v17  ;;  %v846_v18 = vsub.f32 %v3230_v1, %v828_v19 }
 0x4e4   :  { %2432 = vrot.lane.b32.xlu0 %v2928_v53, %s2698_s30  ;;  %v1329_v27 = vpop.f32.mrf.mxu3 }
 0x4e5   :  { %v860_v42 = vmul.f32 1.442695, %v848_v58  ;;  %v3329_v35 = vadd.f32 %v1329_v27, %v3022_v16 }
 0x4e7   :  { %2536 = vpow2.f32 %v860_v42  ;;  %v1353_v3 = vsel %vm433_vm13, %v3329_v35, -inf }
 0x4ea   :  { %v837_v51 = vpop.xlane.xlu2 %836 }
 0x4eb   :  { %v849_v26 = vsub.f32 %v3256_v38, %v837_v51  ;;  %v856_v38 = vmul.f32 1.442695, %v846_v18 }
 0x4ec   :  { %2437 = vrot.lane.b32.xlu0 %v2946_v57, %s2698_s30  ;;  %v1332_v37 = vpop.f32.mrf.mxu3 }
 0x4ed   :  { %v3307_v25 = vpop.eup %2536  ;;  %v862_v30 = vmul.f32 1.442695, %v849_v26  ;;  %v3337_v4 = vadd.f32 %v1332_v37, %v3006_v62 }
 0x4ee   :  { %v880_v41 = vsel %vm433_vm13, %v3307_v25, 0.0 }
 0x4ef   :  { %2538 = vpow2.f32 %v862_v30  ;;  %881 = vadd.xlane.f32.xlu1 %v880_v41  ;;  %v1356_v36 = vsel %vm433_vm13, %v3337_v4, -inf  ;;  %v870_v41 = vpop.xlane.xlu0 %869 }
 0x4f0   :  { %2540 = vpow2.f32 %v856_v38  ;;  %vm897_vm15 = vweird.f32 %v870_v41 }
 0x4f1   :  { %2542 = vpow2.f32 %v858_v23 }
 0x4f4   :  { %v1335_v44 = vpop.f32.mrf.mxu3 }
 0x4f5   :  { %v3312_v34 = vpop.eup %2538  ;;  %v3351_v52 = vadd.f32 %v1335_v44, %v3010_v22 }
 0x4f6   :  { %v883_v24 = vsel %vm433_vm13, %v3312_v34, 0.0  ;;  %v3317_v47 = vpop.eup %2540 }
 0x4f7   :  { %884 = vadd.xlane.f32.xlu1 %v883_v24  ;;  %v874_v1 = vsel %vm433_vm13, %v3317_v47, 0.0  ;;  %v3321_v48 = vpop.eup %2542  ;;  %v1359_v17 = vsel %vm433_vm13, %v3351_v52, -inf }
 0x4f8   :  { %v877_v39 = vsel %vm433_vm13, %v3321_v48, 0.0 }
 0x4fc   :  { %v1338_v14 = vpop.f32.mrf.mxu3 }
 0x4fd   :  { %v3357_v42 = vadd.f32 %v1338_v14, %v3028_v43 }
 0x4ff   :  { %v1362_v30 = vsel %vm433_vm13, %v3357_v42, -inf }
 0x504   :  { %v1341_v10 = vpop.f32.mrf.mxu3 }
 0x505   :  { %v3340_v5 = vadd.f32 %v1341_v10, %v3017_v11 }
 0x506   :  { %875 = vadd.xlane.f32.xlu2 %v874_v1 }
 0x507   :  { %v1365_v13 = vsel %vm433_vm13, %v3340_v5, -inf }
 0x50e   :  { %878 = vadd.xlane.f32.xlu2 %v877_v39  ;;  %v903_v39 = vand.u32 2147483648, %v870_v41 }
 0x510   :  { %v840_v45 = vpop.xlane.xlu1 %839 }
 0x511   :  { %v850_v49 = vsub.f32 %v3270_v56, %v840_v45 }
 0x513   :  { %v864_v63 = vmul.f32 1.442695, %v850_v49  ;;  %v901_v49 = vand.u32 2147483647, %v870_v41 }
 0x515   :  { %2544 = vpow2.f32 %v864_v63  ;;  %vm902_vm2 = vcmp.eq.f32.partialorder %v901_v49, 8.507059e+37 }
 0x516   :  { %1348 = vmax.xlane.f32.xlu0 %v1347_v0  ;;  %1354 = vmax.xlane.f32.xlu2 %v1353_v3  ;;  %2546 = vrcp.f32 %v870_v41  ;;  %v904_v3 = vor.u32 1.1754944e-38, %v903_v39 }
 0x51b   :  { %v3342_v6 = vpop.eup %2544 }
 0x51c   :  { %v886_v56 = vsel %vm433_vm13, %v3342_v6, 0.0 }
 0x51d   :  { %887 = vadd.xlane.f32.xlu1 %v886_v56 }
 0x51e   :  { %1366 = vmax.xlane.f32.xlu0 %v1365_v13  ;;  %1357 = vmax.xlane.f32.xlu2 %v1356_v36  ;;  %v3385_v36 = vpop.f32.mrf.mxu1 }
 0x520   :  { %v873_v38 = vpop.xlane.xlu0 %872 }
 0x521   :  { %2548 = vrcp.f32 %v873_v38  ;;  %vm911_vm4 = vweird.f32 %v873_v38 }
 0x525   :  { %v712_v19 = vpop.f32.mrf.mxu2 }
 0x526   :  { %1360 = vmax.xlane.f32.xlu2 %v1359_v17  ;;  %2314 = vmatmul.msk.f32.gmra.mxu1 %vm359_vm11, %v712_v19  ;;  %v917_v19 = vand.u32 2147483648, %v873_v38 }
 0x528   :  { %v2423_v58 = vpop.permute.xlu1 %2422 }
 0x529   :  { %v2424_v51 = vunpack.i.l.bf16 %v2423_v58  ;;  %v2425_v26 = vunpack.i.h.bf16 %v2423_v58 }
 0x52b   :  { %1068 = vmatpush.msrb.mxu0 %v2424_v51 }
 0x52d   :  { %1069 = vmatpush.msrb.mxu0 %v2425_v26  ;;  %v915_v26 = vand.u32 2147483647, %v873_v38 }
 0x52e   :  { %1363 = vmax.xlane.f32.xlu2 %v1362_v30  ;;  %2355 = vmatmul.msk.f32.vlgmr.msra.gmra.mxu1 %vm359_vm11, %v3226_v61  ;;  %v918_v30 = vor.u32 1.1754944e-38, %v917_v19 }
 0x52f   :  { %vm916_vm6 = vcmp.eq.f32.partialorder %v915_v26, 8.507059e+37 }
 0x532   :  { %2447 = vrot.lane.b32.xlu0 %v2934_v54, %s2699_s5 }
 0x536   :  { %2442 = vrot.lane.b32.xlu1 %v2934_v54, %s2700_s6  ;;  %2356 = vmatmul.msk.f32.gmra.mxu1 %vm359_vm11, %v3214_v28  ;;  %v2547_v54 = vpop.eup %2546 }
 0x537   :  { %v893_v28 = vmul.f32 %v2547_v54, %v870_v41  ;;  %v2549_v12 = vpop.eup %2548  ;;  %vm898_vm14 = vweird.f32 %v2547_v54 }
 0x538   :  { %v843_v27 = vpop.xlane.xlu2 %842  ;;  %v907_v23 = vmul.f32 %v2549_v12, %v873_v38  ;;  %vm899_vm1 = vmor %vm897_vm15, %vm898_vm14  ;;  %vm912_vm3 = vweird.f32 %v2549_v12 }
 0x539   :  { %v851_v44 = vsub.f32 %v3286_v2, %v843_v27  ;;  %vm913_vm5 = vmor %vm911_vm4, %vm912_vm3 }
 0x53e   :  { %2457 = vrot.lane.b32.xlu1 %v2939_v55, %s2699_s5  ;;  %2357 = vmatmul.msk.f32.gmra.mxu1 %vm359_vm11, %v3239_v9  ;;  %v894_v9 = vsub.f32 1.0, %v893_v28 }
 0x540   :  { %v2428_v61 = vpop.permute.xlu2 %2427  ;;  %v895_v40 = vmul.f32 %v2547_v54, %v894_v9 }
 0x541   :  { %v2429_v18 = vunpack.i.l.bf16 %v2428_v61  ;;  %v2430_v24 = vunpack.i.h.bf16 %v2428_v61  ;;  %v3396_v61 = vpop.f32.mrf.mxu1 }
 0x542   :  { %v896_v14 = vadd.f32 %v2547_v54, %v895_v40 }
 0x543   :  { %1070 = vmatpush.msrb.mxu0 %v2429_v18  ;;  %v1346_v37 = vpop.xlane.xlu0 %1345 }
 0x544   :  { %v900_v0 = vsel %vm899_vm1, %v2547_v54, %v896_v14  ;;  %v1368_v2 = vsub.f32 %v3291_v7, %v1346_v37 }
 0x545   :  { %1071 = vmatpush.msrb.mxu0 %v2430_v24  ;;  %v905_v56 = vsel %vm902_vm2, %v904_v3, %v900_v0 }
 0x546   :  { %2452 = vrot.lane.b32.xlu2 %v2939_v55, %s2700_s6  ;;  %2358 = vmatmul.msk.f32.gmra.mxu1 %vm359_vm11, %v3248_v59  ;;  %v908_v59 = vsub.f32 1.0, %v907_v23  ;;  %v1376_v58 = vmul.f32 1.442695, %v1368_v2  ;;  %v1004_v51 = vmul.f32 %v3253_v21, %v905_v56 }
 0x548   :  { %v909_v63 = vmul.f32 %v2549_v12, %v908_v59 }
 0x54a   :  { %v910_v13 = vadd.f32 %v2549_v12, %v909_v63 }
 0x54e   :  { %2359 = vmatmul.msk.f32.gmra.mxu1 %vm359_vm11, %v3224_v60  ;;  %v866_v60 = vmul.f32 1.442695, %v851_v44 }
 0x550   :  { %2550 = vpow2.f32 %v866_v60 }
 0x551   :  { %2552 = vpow2.f32 %v1376_v58 }
 0x553   :  { %v3401_v24 = vpop.xlane.xlu1 %1351 }
 0x556   :  { %v2433_v1 = vpop.permute.xlu0 %2432  ;;  %2360 = vmatmul.msk.f32.gmra.mxu1 %vm359_vm11, %v3264_v8  ;;  %v3388_v7 = vpop.eup %2550 }
 0x557   :  { %v2434_v55 = vunpack.i.l.bf16 %v2433_v1  ;;  %v2435_v45 = vunpack.i.h.bf16 %v2433_v1  ;;  %v889_v27 = vsel %vm433_vm13, %v3388_v7, 0.0  ;;  %v3398_v18 = vpop.eup %2552 }
 0x558   :  { %v1392_v38 = vsel %vm433_vm13, %v3398_v18, 0.0 }
 0x559   :  { %1072 = vmatpush.msrb.mxu0 %v2434_v55 }
 0x55b   :  { %1073 = vmatpush.msrb.mxu0 %v2435_v45 }
 0x55e   :  { %v2438_v8 = vpop.permute.xlu0 %2437  ;;  %2361 = vmatmul.msk.f32.gmra.mxu1 %vm359_vm11, %v3267_v32  ;;  %v914_v32 = vsel %vm913_vm5, %v2549_v12, %v910_v13 }
 0x55f   :  { %v2439_v10 = vunpack.i.l.bf16 %v2438_v8  ;;  %v2440_v17 = vunpack.i.h.bf16 %v2438_v8  ;;  %v919_v41 = vsel %vm916_vm6, %v918_v30, %v914_v32 }
 0x560   :  { %v1005_v21 = vmul.f32 %v3279_v29, %v919_v41 }
 0x561   :  { %1074 = vmatpush.msrb.mxu0 %v2439_v10 }
 0x562   :  { %v3407_v54 = vpop.xlane.xlu1 %881 }
 0x563   :  { %1075 = vmatpush.msrb.mxu0 %v2440_v17  ;;  %vm953_vm3 = vweird.f32 %v3407_v54 }
 0x564   :  { %2291 = vmatmul.msk.f32.vlgmr.msrb.gmra.mxu0 %vm433_vm13, %v1004_v51 }
 0x566   :  { %2362 = vmatmul.msk.f32.gmra.mxu1 %vm359_vm11, %v3295_v15  ;;  %v3405_v15 = vpop.f32.mrf.mxu1 }
 0x568   :  { %890 = vadd.xlane.f32.xlu1 %v889_v27 }
 0x56a   :  { %v3414_v12 = vpop.xlane.xlu1 %884 }
 0x56c   :  { %2292 = vmatmul.msk.f32.gmra.mxu0 %vm433_vm13, %v1005_v21 }
 0x56e   :  { %v3410_v29 = vpop.f32.mrf.mxu1 }
 0x570   :  { %1393 = vadd.xlane.f32.xlu1 %v1392_v38 }
 0x576   :  { %v3419_v39 = vpop.f32.mrf.mxu1 }
 0x579   :  { %v876_v28 = vpop.xlane.xlu2 %875 }
 0x57a   :  { %2554 = vrcp.f32 %v876_v28  ;;  %v931_v55 = vand.u32 2147483648, %v876_v28  ;;  %v929_v59 = vand.u32 2147483647, %v876_v28  ;;  %vm925_vm8 = vweird.f32 %v876_v28 }
 0x57b   :  { %2556 = vrcp.f32 %v3407_v54 }
 0x57c   :  { %v932_v63 = vor.u32 1.1754944e-38, %v931_v55  ;;  %vm930_vm10 = vcmp.eq.f32.partialorder %v929_v59, 8.507059e+37  ;;  %v957_v55 = vand.u32 2147483647, %v3407_v54 }
 0x57e   :  { %vm958_vm5 = vcmp.eq.f32.partialorder %v957_v55, 8.507059e+37 }
 0x580   :  { %v2555_v37 = vpop.eup %2554 }
 0x581   :  { %v3412_v9 = vpop.eup %2556  ;;  %v921_v40 = vmul.f32 %v2555_v37, %v876_v28  ;;  %v879_v23 = vpop.xlane.xlu2 %878  ;;  %vm926_vm7 = vweird.f32 %v2555_v37 }
 0x582   :  { %2558 = vrcp.f32 %v879_v23  ;;  %v949_v1 = vmul.f32 %v3412_v9, %v3407_v54  ;;  %vm927_vm9 = vmor %vm925_vm8, %vm926_vm7  ;;  %v945_v51 = vand.u32 2147483648, %v879_v23  ;;  %v943_v27 = vand.u32 2147483647, %v879_v23 }
 0x583   :  { %v922_v44 = vsub.f32 1.0, %v921_v40  ;;  %2560 = vrcp.f32 %v3414_v12  ;;  %vm939_vm14 = vweird.f32 %v879_v23  ;;  %vm954_vm1 = vweird.f32 %v3412_v9 }
 0x584   :  { %v950_v60 = vsub.f32 1.0, %v949_v1  ;;  %v946_v21 = vor.u32 1.1754944e-38, %v945_v51  ;;  %vm944_vm2 = vcmp.eq.f32.partialorder %v943_v27, 8.507059e+37  ;;  %vm955_vm4 = vmor %vm953_vm3, %vm954_vm1  ;;  %vm967_vm7 = vweird.f32 %v3414_v12 }
 0x585   :  { %v923_v14 = vmul.f32 %v2555_v37, %v922_v44  ;;  %v959_v44 = vand.u32 2147483648, %v3407_v54 }
 0x586   :  { %v951_v58 = vmul.f32 %v3412_v9, %v950_v60 }
 0x587   :  { %v924_v45 = vadd.f32 %v2555_v37, %v923_v14  ;;  %v960_v60 = vor.u32 1.1754944e-38, %v959_v44 }
 0x588   :  { %v2559_v49 = vpop.eup %2558  ;;  %v952_v38 = vadd.f32 %v3412_v9, %v951_v58 }
 0x589   :  { %v935_v0 = vmul.f32 %v2559_v49, %v879_v23  ;;  %v1349_v3 = vpop.xlane.xlu0 %1348  ;;  %v3421_v2 = vpop.xlane.xlu2 %1354  ;;  %v928_v8 = vsel %vm927_vm9, %v2555_v37, %v924_v45  ;;  %vm940_vm12 = vweird.f32 %v2559_v49 }
 0x58a   :  { %v2561_v10 = vpop.eup %2560  ;;  %v1369_v56 = vsub.f32 %v3326_v31, %v1349_v3  ;;  %v933_v13 = vsel %vm930_vm10, %v932_v63, %v928_v8  ;;  %vm941_vm15 = vmor %vm939_vm14, %vm940_vm12  ;;  %v973_v8 = vand.u32 2147483648, %v3414_v12 }
 0x58b   :  { %v936_v19 = vsub.f32 1.0, %v935_v0  ;;  %v1006_v17 = vmul.f32 %v3317_v47, %v933_v13  ;;  %v963_v32 = vmul.f32 %v2561_v10, %v3414_v12  ;;  %v3430_v47 = vpop.f32.mrf.mxu1  ;;  %vm968_vm6 = vweird.f32 %v2561_v10 }
 0x58c   :  { %v1378_v26 = vmul.f32 1.442695, %v1369_v56  ;;  %vm969_vm8 = vmor %vm967_vm7, %vm968_vm6 }
 0x58d   :  { %v937_v30 = vmul.f32 %v2559_v49, %v936_v19  ;;  %2293 = vmatmul.msk.f32.gmra.mxu0 %vm433_vm13, %v1006_v17  ;;  %v964_v28 = vsub.f32 1.0, %v963_v32 }
 0x58e   :  { %2562 = vpow2.f32 %v1378_v26  ;;  %v974_v26 = vor.u32 1.1754944e-38, %v973_v8 }
 0x58f   :  { %v938_v41 = vadd.f32 %v2559_v49, %v937_v30  ;;  %v965_v59 = vmul.f32 %v2561_v10, %v964_v28 }
 0x590   :  { %v888_v31 = vpop.xlane.xlu1 %887 }
 0x591   :  { %2564 = vrcp.f32 %v888_v31  ;;  %v3432_v37 = vpop.xlane.xlu2 %1357  ;;  %v942_v40 = vsel %vm941_vm15, %v2559_v49, %v938_v41  ;;  %v956_v49 = vsel %vm955_vm4, %v3412_v9, %v952_v38  ;;  %v966_v54 = vadd.f32 %v2561_v10, %v965_v59  ;;  %v3452_v17 = vpop.xlane.xlu0 %1366 }
 0x592   :  { %v947_v1 = vsel %vm944_vm2, %v946_v21, %v942_v40  ;;  %v961_v3 = vsel %vm958_vm5, %v960_v60, %v956_v49  ;;  %v971_v9 = vand.u32 2147483647, %v3414_v12  ;;  %v987_v41 = vand.u32 2147483648, %v888_v31 }
 0x593   :  { %v1007_v23 = vmul.f32 %v3321_v48, %v947_v1  ;;  %v3447_v13 = vpop.f32.mrf.mxu1  ;;  %v1008_v19 = vmul.f32 %v3307_v25, %v961_v3  ;;  %v970_v51 = vsel %vm969_vm8, %v2561_v10, %v966_v54  ;;  %vm981_vm12 = vweird.f32 %v888_v31 }
 0x594   :  { %v3438_v14 = vpop.eup %2562  ;;  %vm972_vm9 = vcmp.eq.f32.partialorder %v971_v9, 8.507059e+37  ;;  %v985_v12 = vand.u32 2147483647, %v888_v31  ;;  %v988_v40 = vor.u32 1.1754944e-38, %v987_v41 }
 0x595   :  { %2294 = vmatmul.msk.f32.gmra.mxu0 %vm433_vm13, %v1007_v23  ;;  %v1395_v45 = vsel %vm433_vm13, %v3438_v14, 0.0  ;;  %v975_v32 = vsel %vm972_vm9, %v974_v26, %v970_v51 }
 0x596   :  { %1396 = vadd.xlane.f32.xlu2 %v1395_v45  ;;  %v1009_v25 = vmul.f32 %v3312_v34, %v975_v32  ;;  %vm986_vm15 = vcmp.eq.f32.partialorder %v985_v12, 8.507059e+37 }
 0x597   :  { %v2565_v63 = vpop.eup %2564 }
 0x598   :  { %v977_v0 = vmul.f32 %v2565_v63, %v888_v31  ;;  %vm982_vm10 = vweird.f32 %v2565_v63 }
 0x599   :  { %v3444_v48 = vpop.xlane.xlu2 %1360  ;;  %vm983_vm14 = vmor %vm981_vm12, %vm982_vm10 }
 0x59a   :  { %v978_v56 = vsub.f32 1.0, %v977_v0 }
 0x59c   :  { %v979_v58 = vmul.f32 %v2565_v63, %v978_v56 }
 0x59d   :  { %2295 = vmatmul.msk.f32.gmra.mxu0 %vm433_vm13, %v1008_v19 }
 0x59e   :  { %v980_v27 = vadd.f32 %v2565_v63, %v979_v58 }
 0x5a0   :  { %v984_v10 = vsel %vm983_vm14, %v2565_v63, %v980_v27 }
 0x5a1   :  { %v3455_v30 = vpop.xlane.xlu2 %1363  ;;  %v989_v23 = vsel %vm986_vm15, %v988_v40, %v984_v10 }
 0x5a2   :  { %v1010_v34 = vmul.f32 %v3342_v6, %v989_v23 }
 0x5a3   :  { %v3457_v21 = vpop.f32.mrf.mxu1 }
 0x5a4   :  { %v2448_v38 = vpop.permute.xlu0 %2447 }
 0x5a5   :  { %v2449_v28 = vunpack.i.l.bf16 %v2448_v38  ;;  %2296 = vmatmul.msk.f32.gmra.mxu0 %vm433_vm13, %v1009_v25  ;;  %v2450_v44 = vunpack.i.h.bf16 %v2448_v38 }
 0x5a7   :  { %2055 = vmatpush.msra.mxu3 %v2449_v28 }
 0x5a8   :  { %v2443_v1 = vpop.permute.xlu1 %2442 }
 0x5a9   :  { %v2444_v55 = vunpack.i.l.bf16 %v2443_v1  ;;  %2056 = vmatpush.msra.mxu3 %v2450_v44  ;;  %v2453_v59 = vpop.permute.xlu2 %2452  ;;  %v2445_v31 = vunpack.i.h.bf16 %v2443_v1 }
 0x5aa   :  { %v2454_v60 = vunpack.i.l.bf16 %v2453_v59  ;;  %v2455_v0 = vunpack.i.h.bf16 %v2453_v59 }
 0x5ab   :  { %1592 = vmatpush.msra.mxu0 %v2444_v55  ;;  %v1783_v45 = vpop.f32.mrf.mxu1 }
 0x5ac   :  { %v3463_v49 = vadd.f32 %v1783_v45, %v2989_v20 }
 0x5ad   :  { %2297 = vmatmul.msk.f32.gmra.mxu0 %vm433_vm13, %v1010_v34 }
 0x5ae   :  { %1593 = vmatpush.msra.mxu0 %v2445_v31  ;;  %2467 = vrot.lane.b32.xlu2 %v2928_v53, %s2699_s5  ;;  %v1807_v63 = vsel %vm433_vm13, %v3463_v49, -inf }
 0x5af   :  { %1808 = vmax.xlane.f32.xlu1 %v1807_v63 }
 0x5b0   :  { %1594 = vmatpush.msra.mxu0 %v2454_v60  ;;  %v2458_v3 = vpop.permute.xlu1 %2457 }
 0x5b1   :  { %v2459_v54 = vunpack.i.l.bf16 %v2458_v3  ;;  %v2460_v6 = vunpack.i.h.bf16 %v2458_v3 }
 0x5b2   :  { %1595 = vmatpush.msra.mxu0 %v2455_v0  ;;  %v1371_v0 = vsub.f32 %v3329_v35, %v3421_v2 }
 0x5b3   :  { %v1786_v8 = vpop.f32.mrf.mxu1  ;;  %2057 = vmatpush.msra.mxu3 %v2459_v54 }
 0x5b4   :  { %v3471_v20 = vadd.f32 %v1786_v8, %v2996_v33  ;;  %v1382_v3 = vmul.f32 1.442695, %v1371_v0 }
 0x5b5   :  { %2058 = vmatpush.msra.mxu3 %v2460_v6 }
 0x5b6   :  { %v1810_v56 = vsel %vm433_vm13, %v3471_v20, -inf }
 0x5b7   :  { %1811 = vmax.xlane.f32.xlu1 %v1810_v56 }
 0x5bb   :  { %v1789_v19 = vpop.f32.mrf.mxu1 }
 0x5bc   :  { %v3488_v27 = vadd.f32 %v1789_v19, %v3000_v46 }
 0x5c3   :  { %v1792_v9 = vpop.f32.mrf.mxu1 }
 0x5c4   :  { %v3476_v58 = vadd.f32 %v1792_v9, %v3022_v16 }
 0x5c6   :  { %v1816_v51 = vsel %vm433_vm13, %v3476_v58, -inf }
 0x5c7   :  { %1817 = vmax.xlane.f32.xlu0 %v1816_v51 }
 0x5cb   :  { %v1795_v26 = vpop.f32.mrf.mxu1 }
 0x5cc   :  { %v3481_v32 = vadd.f32 %v1795_v26, %v3006_v62  ;;  %v1813_v62 = vsel %vm433_vm13, %v3488_v27, -inf }
 0x5ce   :  { %v1819_v33 = vsel %vm433_vm13, %v3481_v32, -inf }
 0x5cf   :  { %1820 = vmax.xlane.f32.xlu0 %v1819_v33 }
 0x5d0   :  { %2462 = vrot.lane.b32.xlu1 %v2928_v53, %s2700_s6 }
 0x5d3   :  { %v1798_v16 = vpop.f32.mrf.mxu1 }
 0x5d4   :  { %v3491_v41 = vadd.f32 %v1798_v16, %v3010_v22 }
 0x5d6   :  { %v1822_v25 = vsel %vm433_vm13, %v3491_v41, -inf }
 0x5d7   :  { %1823 = vmax.xlane.f32.xlu0 %v1822_v25  ;;  %1814 = vmax.xlane.f32.xlu2 %v1813_v62 }
 0x5db   :  { %v891_v12 = vpop.xlane.xlu1 %890  ;;  %v1801_v38 = vpop.f32.mrf.mxu1 }
 0x5dc   :  { %2566 = vrcp.f32 %v891_v12  ;;  %v3498_v53 = vadd.f32 %v1801_v38, %v3028_v43  ;;  %v1001_v1 = vand.u32 2147483648, %v891_v12  ;;  %v999_v59 = vand.u32 2147483647, %v891_v12 }
 0x5dd   :  { %v1370_v43 = vsub.f32 %v3298_v50, %v3401_v24  ;;  %vm995_vm2 = vweird.f32 %v891_v12  ;;  %v1372_v50 = vsub.f32 %v3337_v4, %v3432_v37  ;;  %v1374_v4 = vsub.f32 %v3357_v42, %v3455_v30 }
 0x5de   :  { %v1825_v46 = vsel %vm433_vm13, %v3498_v53, -inf  ;;  %v1002_v34 = vor.u32 1.1754944e-38, %v1001_v1  ;;  %vm1000_vm4 = vcmp.eq.f32.partialorder %v999_v59, 8.507059e+37 }
 0x5df   :  { %1826 = vmax.xlane.f32.xlu0 %v1825_v46  ;;  %v1380_v60 = vmul.f32 1.442695, %v1370_v43  ;;  %v1384_v6 = vmul.f32 1.442695, %v1372_v50  ;;  %v1388_v9 = vmul.f32 1.442695, %v1374_v4 }
 0x5e1   :  { %2568 = vpow2.f32 %v1380_v60 }
 0x5e2   :  { %v2567_v22 = vpop.eup %2566  ;;  %2570 = vpow2.f32 %v1382_v3 }
 0x5e3   :  { %v991_v28 = vmul.f32 %v2567_v22, %v891_v12  ;;  %v1804_v10 = vpop.f32.mrf.mxu1  ;;  %vm996_vm1 = vweird.f32 %v2567_v22  ;;  %2572 = vpow2.f32 %v1384_v6  ;;  %v3543_v62 = vpop.xlane.xlu1 %1393 }
 0x5e4   :  { %v3503_v44 = vadd.f32 %v1804_v10, %v3017_v11  ;;  %vm997_vm3 = vmor %vm995_vm2, %vm996_vm1  ;;  %vm1421_vm6 = vweird.f32 %v3543_v62 }
 0x5e5   :  { %v992_v40 = vsub.f32 1.0, %v991_v28 }
 0x5e6   :  { %v1828_v55 = vsel %vm433_vm13, %v3503_v44, -inf }
 0x5e7   :  { %v993_v23 = vmul.f32 %v2567_v22, %v992_v40  ;;  %1829 = vmax.xlane.f32.xlu2 %v1828_v55  ;;  %v3513_v54 = vpop.eup %2568 }
 0x5e8   :  { %v1398_v24 = vsel %vm433_vm13, %v3513_v54, 0.0  ;;  %v3519_v8 = vpop.eup %2570 }
 0x5e9   :  { %v994_v45 = vadd.f32 %v2567_v22, %v993_v23  ;;  %v1401_v35 = vsel %vm433_vm13, %v3519_v8, 0.0  ;;  %v3525_v56 = vpop.eup %2572 }
 0x5ea   :  { %v1404_v19 = vsel %vm433_vm13, %v3525_v56, 0.0 }
 0x5eb   :  { %v998_v31 = vsel %vm997_vm3, %v2567_v22, %v994_v45 }
 0x5ec   :  { %v1003_v11 = vsel %vm1000_vm4, %v1002_v34, %v998_v31 }
 0x5ed   :  { %v1011_v63 = vmul.f32 %v3388_v7, %v1003_v11  ;;  %v1373_v7 = vsub.f32 %v3351_v52, %v3444_v48  ;;  %v1375_v52 = vsub.f32 %v3340_v5, %v3452_v17 }
 0x5ef   :  { %2298 = vmatmul.msk.f32.gmra.mxu0 %vm433_vm13, %v1011_v63  ;;  %v1386_v2 = vmul.f32 1.442695, %v1373_v7  ;;  %v1390_v42 = vmul.f32 1.442695, %v1375_v52 }
 0x5f1   :  { %2574 = vpow2.f32 %v1386_v2 }
 0x5f2   :  { %2576 = vpow2.f32 %v1388_v9 }
 0x5f3   :  { %2578 = vpow2.f32 %v1390_v42 }
 0x5f7   :  { %v3533_v51 = vpop.eup %2574 }
 0x5f8   :  { %v1407_v26 = vsel %vm433_vm13, %v3533_v51, 0.0  ;;  %v3539_v16 = vpop.eup %2576 }
 0x5f9   :  { %v1410_v25 = vsel %vm433_vm13, %v3539_v16, 0.0  ;;  %v3545_v5 = vpop.eup %2578 }
 0x5fa   :  { %1399 = vadd.xlane.f32.xlu1 %v1398_v24  ;;  %v1413_v17 = vsel %vm433_vm13, %v3545_v5, 0.0 }
 0x602   :  { %1402 = vadd.xlane.f32.xlu1 %v1401_v35 }
 0x609   :  { %v3529_v37 = vpop.xlane.xlu2 %1396 }
 0x60a   :  { %1405 = vadd.xlane.f32.xlu1 %v1404_v19  ;;  %vm1435_vm10 = vweird.f32 %v3529_v37 }
 0x611   :  { %v2468_v48 = vpop.permute.xlu2 %2467 }
 0x612   :  { %v2469_v33 = vunpack.i.l.bf16 %v2468_v48  ;;  %1408 = vadd.xlane.f32.xlu1 %v1407_v26  ;;  %v2470_v30 = vunpack.i.h.bf16 %v2468_v48 }
 0x614   :  { %2059 = vmatpush.msra.mxu3 %v2469_v33 }
 0x616   :  { %2060 = vmatpush.msra.mxu3 %v2470_v30 }
 0x61a   :  { %1411 = vadd.xlane.f32.xlu1 %v1410_v25 }
 0x622   :  { %1414 = vadd.xlane.f32.xlu1 %v1413_v17  ;;  %v1809_v12 = vpop.xlane.xlu1 %1808 }
 0x623   :  { %v1831_v38 = vsub.f32 %v3463_v49, %v1809_v12  ;;  %v2628_v49 = vld [vmem:[%s3833_s2 + $0x8] sm:$0xff]  ;;  %v2629_v12 = vld [vmem:[%s3833_s2 + $0x10] sm:$0xff] }
 0x625   :  { %v1839_v46 = vmul.f32 1.442695, %v1831_v38 }
 0x627   :  { %2580 = vpow2.f32 %v1839_v46 }
 0x62a   :  { %v1812_v22 = vpop.xlane.xlu1 %1811 }
 0x62b   :  { %v1832_v28 = vsub.f32 %v3471_v20, %v1812_v22  ;;  %v2630_v22 = vld [vmem:[%s3834_s3] ss:$0 sm:$0xff] }
 0x62d   :  { %v3551_v10 = vpop.eup %2580  ;;  %v1841_v40 = vmul.f32 1.442695, %v1832_v28 }
 0x62e   :  { %v1855_v1 = vsel %vm433_vm13, %v3551_v10, 0.0 }
 0x62f   :  { %2582 = vpow2.f32 %v1841_v40  ;;  %1856 = vadd.xlane.f32.xlu2 %v1855_v1 }
 0x635   :  { %v3555_v23 = vpop.eup %2582 }
 0x636   :  { %v1858_v55 = vsel %vm433_vm13, %v3555_v23, 0.0 }
 0x637   :  { %1859 = vadd.xlane.f32.xlu0 %v1858_v55 }
 0x63a   :  { %v1818_v45 = vpop.xlane.xlu0 %1817 }
 0x63b   :  { %1102 = vrot.lane.b32.xlu1 %v2628_v49, %s2692_s1  ;;  %v1834_v63 = vsub.f32 %v3476_v58, %v1818_v45  ;;  %v1077_v45 = vpop.f32.mrf.mxu0 }
 0x63d   :  { %v1845_v3 = vmul.f32 1.442695, %v1834_v63 }
 0x642   :  { %v2463_v20 = vpop.permute.xlu1 %2462  ;;  %v1821_v60 = vpop.xlane.xlu0 %1820 }
 0x643   :  { %v2464_v59 = vunpack.i.l.bf16 %v2463_v20  ;;  %v2465_v43 = vunpack.i.h.bf16 %v2463_v20  ;;  %v1835_v0 = vsub.f32 %v3481_v32, %v1821_v60 }
 0x645   :  { %1596 = vmatpush.msra.mxu0 %v2464_v59  ;;  %v1847_v24 = vmul.f32 1.442695, %v1835_v0  ;;  %v1425_v0 = vand.u32 2147483647, %v3543_v62 }
 0x647   :  { %2472 = vrot.lane.b32.xlu2 %v2946_v57, %s2700_s6  ;;  %1597 = vmatpush.msra.mxu0 %v2465_v43  ;;  %vm1426_vm8 = vcmp.eq.f32.partialorder %v1425_v0, 8.507059e+37 }
 0x64a   :  { %v1815_v34 = vpop.xlane.xlu2 %1814  ;;  %v1824_v50 = vpop.xlane.xlu0 %1823 }
 0x64b   :  { %2477 = vrot.lane.b32.xlu0 %v2946_v57, %s2699_s5  ;;  %v1833_v31 = vsub.f32 %v3488_v27, %v1815_v34  ;;  %v1836_v57 = vsub.f32 %v3491_v41, %v1824_v50 }
 0x64d   :  { %v1843_v11 = vmul.f32 1.442695, %v1833_v31  ;;  %v1849_v35 = vmul.f32 1.442695, %v1836_v57  ;;  %v2631_v57 = vld [vmem:[%s3833_s2 + $0x18] sm:$0xff]  ;;  %s2701_s2 = smov [#allocation5]  }
 0x64e   :  { %s2228_s13 = sshll.u32 %s2701_s2, 4  ;;  %s2229_s13 = int_to_ptr.vmem [resolvable:$true] %s2228_s13 }
 0x64f   :  { %2584 = vpow2.f32 %v1843_v11  ;;  %v1427_v11 = vand.u32 2147483648, %v3543_v62 }
 0x650   :  { %2586 = vpow2.f32 %v1845_v3 }
 0x651   :  { %2588 = vpow2.f32 %v1847_v24 }
 0x652   :  { %v1827_v58 = vpop.xlane.xlu0 %1826  ;;  %2590 = vpow2.f32 %v1849_v35  ;;  %v1428_v35 = vor.u32 1.1754944e-38, %v1427_v11 }
 0x653   :  { %v1837_v19 = vsub.f32 %v3498_v53, %v1827_v58 }
 0x655   :  { %v3570_v6 = vpop.eup %2584  ;;  %v1851_v9 = vmul.f32 1.442695, %v1837_v19 }
 0x656   :  { %v1861_v7 = vsel %vm433_vm13, %v3570_v6, 0.0  ;;  %v3575_v27 = vpop.eup %2586 }
 0x657   :  { %v3579_v32 = vpop.eup %2588  ;;  %v1864_v4 = vsel %vm433_vm13, %v3575_v27, 0.0  ;;  %2592 = vpow2.f32 %v1851_v9 }
 0x658   :  { %v1867_v41 = vsel %vm433_vm13, %v3579_v32, 0.0  ;;  %v3586_v48 = vpop.eup %2590 }
 0x659   :  { %v1870_v42 = vsel %vm433_vm13, %v3586_v48, 0.0 }
 0x65a   :  { %v1830_v52 = vpop.xlane.xlu2 %1829 }
 0x65b   :  { %v1838_v33 = vsub.f32 %v3503_v44, %v1830_v52 }
 0x65d   :  { %v1853_v30 = vmul.f32 1.442695, %v1838_v33  ;;  %v3593_v25 = vpop.eup %2592 }
 0x65e   :  { %v1873_v17 = vsel %vm433_vm13, %v3593_v25, 0.0 }
 0x65f   :  { %2594 = vpow2.f32 %v1853_v30 }
 0x660   :  { %2596 = vrcp.f32 %v3543_v62 }
 0x661   :  { %2598 = vrcp.f32 %v3529_v37 }
 0x665   :  { %v3603_v44 = vpop.eup %2594 }
 0x666   :  { %v1876_v38 = vsel %vm433_vm13, %v3603_v44, 0.0  ;;  %v2597_v28 = vpop.eup %2596 }
 0x667   :  { %v1417_v40 = vmul.f32 %v2597_v28, %v3543_v62  ;;  %v2599_v49 = vpop.eup %2598  ;;  %vm1422_vm5 = vweird.f32 %v2597_v28 }
 0x668   :  { %v1431_v59 = vmul.f32 %v2599_v49, %v3529_v37  ;;  %vm1423_vm7 = vmor %vm1421_vm6, %vm1422_vm5  ;;  %vm1436_vm9 = vweird.f32 %v2599_v49 }
 0x669   :  { %v1418_v55 = vsub.f32 1.0, %v1417_v40  ;;  %vm1437_vm12 = vmor %vm1435_vm10, %vm1436_vm9 }
 0x66a   :  { %v1432_v31 = vsub.f32 1.0, %v1431_v59 }
 0x66b   :  { %v1419_v20 = vmul.f32 %v2597_v28, %v1418_v55 }
 0x66c   :  { %v1433_v50 = vmul.f32 %v2599_v49, %v1432_v31 }
 0x66d   :  { %v3577_v2 = vpop.xlane.xlu1 %1399  ;;  %v1420_v34 = vadd.f32 %v2597_v28, %v1419_v20 }
 0x66e   :  { %2600 = vrcp.f32 %v3577_v2  ;;  %v1434_v33 = vadd.f32 %v2599_v49, %v1433_v50  ;;  %vm1449_vm1 = vweird.f32 %v3577_v2 }
 0x66f   :  { %v1424_v3 = vsel %vm1423_vm7, %v2597_v28, %v1420_v34  ;;  %v1439_v28 = vand.u32 2147483647, %v3529_v37 }
 0x670   :  { %1862 = vadd.xlane.f32.xlu2 %v1861_v7  ;;  %v1429_v19 = vsel %vm1426_vm8, %v1428_v35, %v1424_v3  ;;  %v1438_v20 = vsel %vm1437_vm12, %v2599_v49, %v1434_v33  ;;  %v1455_v3 = vand.u32 2147483648, %v3577_v2 }
 0x671   :  { %vm1440_vm14 = vcmp.eq.f32.partialorder %v1439_v28, 8.507059e+37 }
 0x674   :  { %v3623_v60 = vpop.eup %2600 }
 0x675   :  { %1865 = vadd.xlane.f32.xlu0 %v1864_v4  ;;  %v3588_v26 = vpop.xlane.xlu1 %1402  ;;  %v1445_v24 = vmul.f32 %v3623_v60, %v3577_v2  ;;  %vm1450_vm15 = vweird.f32 %v3623_v60 }
 0x676   :  { %vm1451_vm3 = vmor %vm1449_vm1, %vm1450_vm15  ;;  %vm1463_vm8 = vweird.f32 %v3588_v26 }
 0x677   :  { %v1446_v52 = vsub.f32 1.0, %v1445_v24 }
 0x678   :  { %1868 = vadd.xlane.f32.xlu2 %v1867_v41 }
 0x679   :  { %v1447_v55 = vmul.f32 %v3623_v60, %v1446_v52 }
 0x67d   :  { %v3595_v53 = vpop.xlane.xlu1 %1405 }
 0x680   :  { %1871 = vadd.xlane.f32.xlu2 %v1870_v42  ;;  %v1441_v42 = vand.u32 2147483648, %v3529_v37 }
 0x682   :  { %v1442_v34 = vor.u32 1.1754944e-38, %v1441_v42 }
 0x684   :  { %v1443_v11 = vsel %vm1440_vm14, %v1442_v34, %v1438_v20 }
 0x685   :  { %v3608_v46 = vpop.xlane.xlu1 %1408  ;;  %v1529_v24 = vmul.f32 %v3438_v14, %v1443_v11 }
 0x688   :  { %1874 = vadd.xlane.f32.xlu2 %v1873_v17 }
 0x689   :  { %1626 = vrot.lane.b32.xlu0 %v2629_v12, %s2692_s1  ;;  %v1080_v12 = vpop.f32.mrf.mxu0 }
 0x68d   :  { %v3616_v1 = vpop.xlane.xlu1 %1411 }
 0x690   :  { %1877 = vadd.xlane.f32.xlu2 %v1876_v38 }
 0x691   :  { %2165 = vrot.lane.b32.xlu0 %v2630_v22, %s2692_s1  ;;  %v1528_v22 = vmul.f32 %v3398_v18, %v1429_v19  ;;  %v1083_v49 = vpop.f32.mrf.mxu0 }
 0x695   :  { %v3627_v63 = vpop.xlane.xlu1 %1414 }
 0x6a2   :  { %v3620_v43 = vpop.xlane.xlu2 %1856 }
 0x6a3   :  { %2602 = vrcp.f32 %v3620_v43  ;;  %vm1884_vm4 = vweird.f32 %v3620_v43 }
 0x6a4   :  { %2604 = vrcp.f32 %v3588_v26 }
 0x6a8   :  { %2089 = vrot.lane.b32.xlu2 %v2631_v57, %s2692_s1  ;;  %v1453_v57 = vand.u32 2147483647, %v3577_v2  ;;  %v1456_v2 = vor.u32 1.1754944e-38, %v1455_v3 }
 0x6a9   :  { %v3637_v7 = vpop.eup %2602 }
 0x6aa   :  { %v2473_v58 = vpop.permute.xlu2 %2472  ;;  %v3639_v4 = vpop.xlane.xlu0 %1859  ;;  %v1880_v41 = vmul.f32 %v3637_v7, %v3620_v43  ;;  %vm1885_vm2 = vweird.f32 %v3637_v7  ;;  %vm1454_vm6 = vcmp.eq.f32.partialorder %v1453_v57, 8.507059e+37 }
 0x6ab   :  { %v3641_v62 = vpop.eup %2604  ;;  %v2474_v9 = vunpack.i.l.bf16 %v2473_v58  ;;  %2606 = vrcp.f32 %v3639_v4  ;;  %v2475_v30 = vunpack.i.h.bf16 %v2473_v58  ;;  %vm1886_vm5 = vmor %vm1884_vm4, %vm1885_vm2  ;;  %vm1898_vm14 = vweird.f32 %v3639_v4 }
 0x6ac   :  { %v1459_v38 = vmul.f32 %v3641_v62, %v3588_v26  ;;  %2608 = vrcp.f32 %v3595_v53  ;;  %v1881_v40 = vsub.f32 1.0, %v1880_v41  ;;  %v1890_v41 = vand.u32 2147483648, %v3620_v43 }
 0x6ad   :  { %v1103_v17 = vpop.permute.xlu1 %1102  ;;  %1598 = vmatpush.msra.mxu0 %v2474_v9  ;;  %2610 = vrcp.f32 %v3608_v46  ;;  %v1888_v9 = vand.u32 2147483647, %v3620_v43  ;;  %vm1464_vm7 = vweird.f32 %v3641_v62  ;;  %vm1477_vm4 = vweird.f32 %v3595_v53 }
 0x6ae   :  { %1144 = vmatpush.msra.mxu2 %v1103_v17  ;;  %v1460_v31 = vsub.f32 1.0, %v1459_v38  ;;  %v1882_v18 = vmul.f32 %v3637_v7, %v1881_v40  ;;  %vm3693_vm10 = vmor %vm1463_vm8, %vm1464_vm7  ;;  %2612 = vrcp.f32 %v3616_v1  ;;  %vm1491_vm8 = vweird.f32 %v3608_v46 }
 0x6af   :  { %2299 = vmatmul.msk.f32.vlgmr.msra.gmra.mxu2 %vm359_vm11, %v1077_v45  ;;  %1599 = vmatpush.msra.mxu0 %v2475_v30  ;;  %v1448_v45 = vadd.f32 %v3623_v60, %v1447_v55  ;;  %vm1889_vm9 = vcmp.eq.f32.partialorder %v1888_v9, 8.507059e+37  ;;  %v1467_v55 = vand.u32 2147483647, %v3588_v26  ;;  %2614 = vrcp.f32 %v3627_v63 }
 0x6b0   :  { %2331 = vmatmul.msk.f32.vlgmr.msra.gmra.mxu0 %vm433_vm13, %v1528_v22  ;;  %v1461_v50 = vmul.f32 %v3641_v62, %v1460_v31  ;;  %v1883_v35 = vadd.f32 %v3637_v7, %v1882_v18 }
 0x6b1   :  { %v3657_v59 = vpop.eup %2606  ;;  %v1452_v14 = vsel %vm1451_vm3, %v3623_v60, %v1448_v45  ;;  %v1469_v60 = vand.u32 2147483648, %v3588_v26  ;;  %v1904_v26 = vand.u32 2147483648, %v3639_v4  ;;  %v1902_v45 = vand.u32 2147483647, %v3639_v4 }
 0x6b2   :  { %v1894_v37 = vmul.f32 %v3657_v59, %v3639_v4  ;;  %v3664_v0 = vpop.eup %2608  ;;  %v1887_v52 = vsel %vm1886_vm5, %v3637_v7, %v1883_v35  ;;  %v1457_v42 = vsel %vm1454_vm6, %v1456_v2, %v1452_v14  ;;  %v1462_v30 = vadd.f32 %v3641_v62, %v1461_v50 }
 0x6b3   :  { %v1473_v19 = vmul.f32 %v3664_v0, %v3595_v53  ;;  %v3686_v38 = vpop.eup %2610  ;;  %v1530_v40 = vmul.f32 %v3513_v54, %v1457_v42  ;;  %vm1899_vm12 = vweird.f32 %v3657_v59  ;;  %v1086_v54 = vpop.f32.mrf.mxu0  ;;  %v1470_v11 = vor.u32 1.1754944e-38, %v1469_v60 }
 0x6b4   :  { %v1895_v58 = vsub.f32 1.0, %v1894_v37  ;;  %v1466_v20 = vsel %vm3693_vm10, %v3641_v62, %v1462_v30  ;;  %v1487_v18 = vmul.f32 %v3686_v38, %v3608_v46  ;;  %vm1468_vm15 = vcmp.eq.f32.partialorder %v1467_v55, 8.507059e+37  ;;  %vm1900_vm1 = vmor %vm1898_vm14, %vm1899_vm12  ;;  %v2613_v35 = vpop.eup %2612 }
 0x6b5   :  { %v1474_v17 = vsub.f32 1.0, %v1473_v19  ;;  %v1471_v3 = vsel %vm1468_vm15, %v1470_v11, %v1466_v20  ;;  %vm1478_vm2 = vweird.f32 %v3664_v0  ;;  %vm1903_vm3 = vcmp.eq.f32.partialorder %v1902_v45, 8.507059e+37  ;;  %v2615_v42 = vpop.eup %2614 }
 0x6b6   :  { %v1896_v33 = vmul.f32 %v3657_v59, %v1895_v58  ;;  %v1488_v50 = vsub.f32 1.0, %v1487_v18  ;;  %v1483_v58 = vand.u32 2147483648, %v3595_v53  ;;  %v1481_v19 = vand.u32 2147483647, %v3595_v53  ;;  %vm1479_vm5 = vmor %vm1477_vm4, %vm1478_vm2 }
 0x6b7   :  { %2300 = vmatmul.msk.f32.gmra.mxu2 %vm359_vm11, %v1080_v12  ;;  %v1891_v12 = vor.u32 1.1754944e-38, %v1890_v41  ;;  %v1475_v31 = vmul.f32 %v3664_v0, %v1474_v17  ;;  %v1501_v41 = vmul.f32 %v2613_v35, %v3616_v1  ;;  %vm1492_vm7 = vweird.f32 %v3686_v38 }
 0x6b8   :  { %2332 = vmatmul.msk.f32.gmra.mxu0 %vm433_vm13, %v1529_v24  ;;  %v1897_v34 = vadd.f32 %v3657_v59, %v1896_v33  ;;  %v1905_v24 = vor.u32 1.1754944e-38, %v1904_v26  ;;  %v1484_v2 = vor.u32 1.1754944e-38, %v1483_v58  ;;  %vm1482_vm6 = vcmp.eq.f32.partialorder %v1481_v19, 8.507059e+37 }
 0x6b9   :  { %v1892_v22 = vsel %vm1889_vm9, %v1891_v12, %v1887_v52  ;;  %v1476_v57 = vadd.f32 %v3664_v0, %v1475_v31  ;;  %v1502_v52 = vsub.f32 1.0, %v1501_v41  ;;  %v1497_v30 = vand.u32 2147483648, %v3608_v46  ;;  %vm1493_vm9 = vmor %vm1491_vm8, %vm1492_vm7 }
 0x6ba   :  { %v1991_v62 = vmul.f32 %v3551_v10, %v1892_v22  ;;  %v1531_v10 = vmul.f32 %v3519_v8, %v1471_v3  ;;  %v1495_v17 = vand.u32 2147483647, %v3608_v46  ;;  %v1515_v12 = vmul.f32 %v2615_v42, %v3627_v63 }
 0x6bb   :  { %v1480_v14 = vsel %vm1479_vm5, %v3664_v0, %v1476_v57  ;;  %v1089_v8 = vpop.f32.mrf.mxu0  ;;  %vm1506_vm12 = vweird.f32 %v2613_v35  ;;  %vm1505_vm14 = vweird.f32 %v3616_v1  ;;  %v1509_v55 = vand.u32 2147483647, %v3616_v1 }
 0x6bc   :  { %v1485_v53 = vsel %vm1482_vm6, %v1484_v2, %v1480_v14  ;;  %vm1496_vm10 = vcmp.eq.f32.partialorder %v1495_v17, 8.507059e+37  ;;  %vm1507_vm15 = vmor %vm1505_vm14, %vm1506_vm12  ;;  %vm1520_vm2 = vweird.f32 %v2615_v42  ;;  %v1525_v18 = vand.u32 2147483648, %v3627_v63 }
 0x6bd   :  { %v2478_v43 = vpop.permute.xlu0 %2477  ;;  %v1532_v0 = vmul.f32 %v3525_v56, %v1485_v53  ;;  %v1511_v56 = vand.u32 2147483648, %v3616_v1  ;;  %v1523_v1 = vand.u32 2147483647, %v3627_v63 }
 0x6be   :  { %v2479_v28 = vunpack.i.l.bf16 %v2478_v43  ;;  %v2480_v37 = vunpack.i.h.bf16 %v2478_v43  ;;  %v1498_v43 = vor.u32 1.1754944e-38, %v1497_v30  ;;  %v1526_v11 = vor.u32 1.1754944e-38, %v1525_v18 }
 0x6bf   :  { %2301 = vmatmul.msk.f32.gmra.mxu2 %vm359_vm11, %v1083_v49  ;;  %v1901_v49 = vsel %vm1900_vm1, %v3657_v59, %v1897_v34  ;;  %v1489_v59 = vmul.f32 %v3686_v38, %v1488_v50  ;;  %v1512_v34 = vor.u32 1.1754944e-38, %v1511_v56  ;;  %vm1510_vm1 = vcmp.eq.f32.partialorder %v1509_v55, 8.507059e+37 }
 0x6c0   :  { %2333 = vmatmul.msk.f32.gmra.mxu0 %vm433_vm13, %v1530_v40  ;;  %2061 = vmatpush.msra.mxu3 %v2479_v28  ;;  %v1906_v4 = vsel %vm1903_vm3, %v1905_v24, %v1901_v49  ;;  %v1516_v40 = vsub.f32 1.0, %v1515_v12  ;;  %vm1519_vm3 = vweird.f32 %v3627_v63  ;;  %vm1524_vm5 = vcmp.eq.f32.partialorder %v1523_v1, 8.507059e+37 }
 0x6c1   :  { %v1992_v9 = vmul.f32 %v3555_v23, %v1906_v4  ;;  %v1490_v33 = vadd.f32 %v3686_v38, %v1489_v59  ;;  %v1503_v23 = vmul.f32 %v2613_v35, %v1502_v52  ;;  %vm1521_vm4 = vmor %vm1519_vm3, %vm1520_vm2 }
 0x6c2   :  { %2062 = vmatpush.msra.mxu3 %v2480_v37  ;;  %v1517_v20 = vmul.f32 %v2615_v42, %v1516_v40 }
 0x6c3   :  { %2363 = vmatmul.msk.f32.vlgmr.msra.gmra.mxu3 %vm433_vm13, %v1991_v62  ;;  %v1494_v60 = vsel %vm1493_vm9, %v3686_v38, %v1490_v33  ;;  %v1092_v28 = vpop.f32.mrf.mxu0  ;;  %v1504_v7 = vadd.f32 %v2613_v35, %v1503_v23 }
 0x6c4   :  { %v1499_v22 = vsel %vm1496_vm10, %v1498_v43, %v1494_v60  ;;  %v1518_v31 = vadd.f32 %v2615_v42, %v1517_v20 }
 0x6c5   :  { %v1533_v46 = vmul.f32 %v3533_v51, %v1499_v22  ;;  %v1508_v38 = vsel %vm1507_vm15, %v2613_v35, %v1504_v7 }
 0x6c6   :  { %v1522_v37 = vsel %vm1521_vm4, %v2615_v42, %v1518_v31 }
 0x6c7   :  { %2302 = vmatmul.msk.f32.gmra.mxu2 %vm359_vm11, %v1086_v54  ;;  %v1513_v54 = vsel %vm1510_vm1, %v1512_v34, %v1508_v38  ;;  %v1527_v45 = vsel %vm1524_vm5, %v1526_v11, %v1522_v37 }
 0x6c8   :  { %2334 = vmatmul.msk.f32.gmra.mxu0 %vm433_vm13, %v1531_v10  ;;  %v1534_v51 = vmul.f32 %v3539_v16, %v1513_v54  ;;  %v1535_v49 = vmul.f32 %v3545_v5, %v1527_v45 }
 0x6cb   :  { %2364 = vmatmul.msk.f32.gmra.mxu3 %vm433_vm13, %v1992_v9  ;;  %v1095_v26 = vpop.f32.mrf.mxu0 }
 0x6cf   :  { %2303 = vmatmul.msk.f32.gmra.mxu2 %vm359_vm11, %v1089_v8 }
 0x6d0   :  { %2335 = vmatmul.msk.f32.gmra.mxu0 %vm433_vm13, %v1532_v0 }
 0x6d3   :  { %v1098_v3 = vpop.f32.mrf.mxu0 }
 0x6d7   :  { %2304 = vmatmul.msk.f32.gmra.mxu2 %vm359_vm11, %v1092_v28 }
 0x6d8   :  { %2336 = vmatmul.msk.f32.gmra.mxu0 %vm433_vm13, %v1533_v46 }
 0x6df   :  { %2305 = vmatmul.msk.f32.gmra.mxu2 %vm359_vm11, %v1095_v26 }
 0x6e0   :  { %2337 = vmatmul.msk.f32.gmra.mxu0 %vm433_vm13, %v1534_v51 }
 0x6e3   :  { %v1863_v62 = vpop.xlane.xlu2 %1862 }
 0x6e4   :  { %2616 = vrcp.f32 %v1863_v62  ;;  %v1918_v10 = vand.u32 2147483648, %v1863_v62  ;;  %v1916_v19 = vand.u32 2147483647, %v1863_v62  ;;  %vm1912_vm7 = vweird.f32 %v1863_v62 }
 0x6e6   :  { %v1919_v14 = vor.u32 1.1754944e-38, %v1918_v10  ;;  %vm1917_vm9 = vcmp.eq.f32.partialorder %v1916_v19, 8.507059e+37 }
 0x6e7   :  { %2306 = vmatmul.msk.f32.gmra.mxu2 %vm359_vm11, %v1098_v3 }
 0x6e8   :  { %v1866_v50 = vpop.xlane.xlu0 %1865  ;;  %2338 = vmatmul.msk.f32.gmra.mxu0 %vm433_vm13, %v1535_v49 }
 0x6e9   :  { %2618 = vrcp.f32 %v1866_v50  ;;  %v1932_v52 = vand.u32 2147483648, %v1866_v50  ;;  %vm1926_vm12 = vweird.f32 %v1866_v50  ;;  %v1930_v17 = vand.u32 2147483647, %v1866_v50 }
 0x6ea   :  { %v2617_v16 = vpop.eup %2616 }
 0x6eb   :  { %v1908_v63 = vmul.f32 %v2617_v16, %v1863_v62  ;;  %v1869_v24 = vpop.xlane.xlu2 %1868  ;;  %vm1913_vm6 = vweird.f32 %v2617_v16  ;;  %v1933_v60 = vor.u32 1.1754944e-38, %v1932_v52  ;;  %vm1931_vm15 = vcmp.eq.f32.partialorder %v1930_v17, 8.507059e+37 }
 0x6ec   :  { %2620 = vrcp.f32 %v1869_v24  ;;  %vm1914_vm8 = vmor %vm1912_vm7, %vm1913_vm6  ;;  %v1946_v56 = vand.u32 2147483648, %v1869_v24  ;;  %vm1940_vm2 = vweird.f32 %v1869_v24  ;;  %v1944_v55 = vand.u32 2147483647, %v1869_v24 }
 0x6ed   :  { %v1909_v57 = vsub.f32 1.0, %v1908_v63 }
 0x6ee   :  { %v1947_v54 = vor.u32 1.1754944e-38, %v1946_v56  ;;  %vm1945_vm4 = vcmp.eq.f32.partialorder %v1944_v55, 8.507059e+37 }
 0x6ef   :  { %v2619_v35 = vpop.eup %2618  ;;  %v1910_v58 = vmul.f32 %v2617_v16, %v1909_v57 }
 0x6f0   :  { %v1922_v4 = vmul.f32 %v2619_v35, %v1866_v50  ;;  %vm1927_vm10 = vweird.f32 %v2619_v35 }
 0x6f1   :  { %v1911_v59 = vadd.f32 %v2617_v16, %v1910_v58  ;;  %vm1928_vm14 = vmor %vm1926_vm12, %vm1927_vm10 }
 0x6f2   :  { %v2621_v5 = vpop.eup %2620  ;;  %v1923_v41 = vsub.f32 1.0, %v1922_v4 }
 0x6f3   :  { %v1936_v2 = vmul.f32 %v2621_v5, %v1869_v24  ;;  %v1872_v9 = vpop.xlane.xlu2 %1871  ;;  %v1915_v8 = vsel %vm1914_vm8, %v2617_v16, %v1911_v59  ;;  %vm1941_vm1 = vweird.f32 %v2621_v5 }
 0x6f4   :  { %v1924_v53 = vmul.f32 %v2619_v35, %v1923_v41  ;;  %2622 = vrcp.f32 %v1872_v9  ;;  %v1920_v42 = vsel %vm1917_vm9, %v1919_v14, %v1915_v8  ;;  %vm1942_vm3 = vmor %vm1940_vm2, %vm1941_vm1  ;;  %v1960_v37 = vand.u32 2147483648, %v1872_v9 }
 0x6f5   :  { %v1937_v33 = vsub.f32 1.0, %v1936_v2  ;;  %v1993_v30 = vmul.f32 %v3570_v6, %v1920_v42  ;;  %vm1954_vm6 = vweird.f32 %v1872_v9  ;;  %v1958_v62 = vand.u32 2147483647, %v1872_v9 }
 0x6f6   :  { %v1925_v0 = vadd.f32 %v2619_v35, %v1924_v53  ;;  %v1961_v49 = vor.u32 1.1754944e-38, %v1960_v37 }
 0x6f7   :  { %v1938_v23 = vmul.f32 %v2621_v5, %v1937_v33  ;;  %2365 = vmatmul.msk.f32.gmra.mxu3 %vm433_vm13, %v1993_v30  ;;  %vm1959_vm8 = vcmp.eq.f32.partialorder %v1958_v62, 8.507059e+37  ;;  %v2184_v62 = vld [vmem:[#allocation2 + $0x40] sm:$0xff] }
 0x6f8   :  { %v1929_v12 = vsel %vm1928_vm14, %v2619_v35, %v1925_v0 }
 0x6f9   :  { %v1934_v40 = vsel %vm1931_vm15, %v1933_v60, %v1929_v12  ;;  %v1939_v7 = vadd.f32 %v2621_v5, %v1938_v23 }
 0x6fa   :  { %v2623_v43 = vpop.eup %2622  ;;  %v1994_v6 = vmul.f32 %v3575_v27, %v1934_v40 }
 0x6fb   :  { %v1950_v22 = vmul.f32 %v2623_v43, %v1872_v9  ;;  %v1875_v28 = vpop.xlane.xlu2 %1874  ;;  %v1943_v38 = vsel %vm1942_vm3, %v2621_v5, %v1939_v7  ;;  %v1627_v34 = vpop.permute.xlu0 %1626  ;;  %vm1955_vm5 = vweird.f32 %v2623_v43 }
 0x6fc   :  { %2624 = vrcp.f32 %v1875_v28  ;;  %1668 = vmatpush.msrb.mxu2 %v1627_v34  ;;  %v1948_v51 = vsel %vm1945_vm4, %v1947_v54, %v1943_v38  ;;  %vm1956_vm7 = vmor %vm1954_vm6, %vm1955_vm5  ;;  %v1974_v35 = vand.u32 2147483648, %v1875_v28  ;;  %vm1968_vm10 = vweird.f32 %v1875_v28 }
 0x6fd   :  { %v1951_v46 = vsub.f32 1.0, %v1950_v22  ;;  %v1995_v27 = vmul.f32 %v3579_v32, %v1948_v51  ;;  %v1972_v10 = vand.u32 2147483647, %v1875_v28 }
 0x6fe   :  { %v1975_v59 = vor.u32 1.1754944e-38, %v1974_v35  ;;  %v2185_v35 = vld [vmem:[#allocation2 + $0x48] sm:$0xff] }
 0x6ff   :  { %v1952_v20 = vmul.f32 %v2623_v43, %v1951_v46  ;;  %2366 = vmatmul.msk.f32.gmra.mxu3 %vm433_vm13, %v1994_v6  ;;  %vm1973_vm14 = vcmp.eq.f32.partialorder %v1972_v10, 8.507059e+37 }
 0x701   :  { %v1953_v1 = vadd.f32 %v2623_v43, %v1952_v20 }
 0x702   :  { %v2625_v31 = vpop.eup %2624 }
 0x703   :  { %v1964_v18 = vmul.f32 %v2625_v31, %v1875_v28  ;;  %v1878_v26 = vpop.xlane.xlu2 %1877  ;;  %v1957_v3 = vsel %vm1956_vm7, %v2623_v43, %v1953_v1  ;;  %vm1969_vm9 = vweird.f32 %v2625_v31  ;;  %v3789_v37 = vpop.permute.xlu0 %2165 }
 0x704   :  { %2626 = vrcp.f32 %v1878_v26  ;;  %v1962_v63 = vsel %vm1959_vm8, %v1961_v49, %v1957_v3  ;;  %vm1970_vm12 = vmor %vm1968_vm10, %vm1969_vm9  ;;  %v1988_v14 = vand.u32 2147483648, %v1878_v26  ;;  %vm1982_vm1 = vweird.f32 %v1878_v26 }
 0x705   :  { %v1965_v11 = vsub.f32 1.0, %v1964_v18  ;;  %v1996_v32 = vmul.f32 %v3586_v48, %v1962_v63  ;;  %v1986_v9 = vand.u32 2147483647, %v1878_v26 }
 0x706   :  { %v1989_v8 = vor.u32 1.1754944e-38, %v1988_v14  ;;  %v2178_v14 = vld [vmem:[#allocation2 + $0x10] sm:$0xff] }
 0x707   :  { %v1966_v45 = vmul.f32 %v2625_v31, %v1965_v11  ;;  %2367 = vmatmul.msk.f32.gmra.mxu3 %vm433_vm13, %v1995_v27  ;;  %vm1987_vm3 = vcmp.eq.f32.partialorder %v1986_v9, 8.507059e+37  ;;  %v2176_v27 = vld [vmem:[#allocation2] sm:$0xff] }
 0x709   :  { %v1967_v57 = vadd.f32 %v2625_v31, %v1966_v45 }
 0x70a   :  { %v2627_v50 = vpop.eup %2626 }
 0x70b   :  { %v1978_v16 = vmul.f32 %v2627_v50, %v1878_v26  ;;  %v2090_v24 = vpop.permute.xlu2 %2089  ;;  %v1971_v19 = vsel %vm1970_vm12, %v2625_v31, %v1967_v57  ;;  %vm1983_vm15 = vweird.f32 %v2627_v50  ;;  %v2177_v57 = vld [vmem:[#allocation2 + $0x8] sm:$0xff] }
 0x70c   :  { %2131 = vmatpush.msrb.mxu0 %v2090_v24  ;;  %v1976_v5 = vsel %vm1973_vm14, %v1975_v59, %v1971_v19  ;;  %vm1984_vm2 = vmor %vm1982_vm1, %vm1983_vm15 }
 0x70d   :  { %v1979_v58 = vsub.f32 1.0, %v1978_v16  ;;  %v1997_v2 = vmul.f32 %v3593_v25, %v1976_v5 }
 0x70f   :  { %v1980_v4 = vmul.f32 %v2627_v50, %v1979_v58  ;;  %2368 = vmatmul.msk.f32.gmra.mxu3 %vm433_vm13, %v1996_v32 }
 0x711   :  { %v1981_v41 = vadd.f32 %v2627_v50, %v1980_v4 }
 0x713   :  { %v1985_v48 = vsel %vm1984_vm2, %v2627_v50, %v1981_v41 }
 0x714   :  { %v1990_v53 = vsel %vm1987_vm3, %v1989_v8, %v1985_v48 }
 0x715   :  { %v1998_v52 = vmul.f32 %v3603_v44, %v1990_v53 }
 0x717   :  { %2369 = vmatmul.msk.f32.gmra.mxu3 %vm433_vm13, %v1997_v2  ;;  %v2186_v2 = vld [vmem:[#allocation2 + $0x50] sm:$0xff] }
 0x71f   :  { %2370 = vmatmul.msk.f32.gmra.mxu3 %vm433_vm13, %v1998_v52 }
 0x72d   :  { %v1601_v33 = vpop.f32.mrf.mxu0 }
 0x72e   :  { %2339 = vmatmul.msk.f32.vlgmr.msrb.gmra.mxu2 %vm359_vm11, %v1601_v33 }
 0x732   :  { %v1146_v43 = vpop.f32.mrf.mxu2 }
 0x733   :  { %v1216_v26 = vadd.f32 %v3385_v36, %v1146_v43 }
 0x735   :  { %v1604_v42 = vpop.f32.mrf.mxu0 }
 0x736   :  { %2340 = vmatmul.msk.f32.gmra.mxu2 %vm359_vm11, %v1604_v42 }
 0x73a   :  { %v1149_v22 = vpop.f32.mrf.mxu2 }
 0x73b   :  { %v1219_v49 = vadd.f32 %v3396_v61, %v1149_v22  ;;  %v2180_v22 = vld [vmem:[#allocation2 + $0x20] sm:$0xff] }
 0x73d   :  { %v1607_v30 = vpop.f32.mrf.mxu0 }
 0x73e   :  { %2341 = vmatmul.msk.f32.gmra.mxu2 %vm359_vm11, %v1607_v30 }
 0x742   :  { %v1152_v7 = vpop.f32.mrf.mxu2 }
 0x743   :  { %v1222_v19 = vadd.f32 %v3405_v15, %v1152_v7  ;;  %v2179_v15 = vld [vmem:[#allocation2 + $0x18] sm:$0xff] }
 0x745   :  { %v1610_v25 = vpop.f32.mrf.mxu0 }
 0x746   :  { %2342 = vmatmul.msk.f32.gmra.mxu2 %vm359_vm11, %v1610_v25  ;;  %v2064_v0 = vpop.f32.mrf.mxu3  ;;  %v2187_v25 = vld [vmem:[#allocation2 + $0x58] sm:$0xff] }
 0x747   :  { %2371 = vmatmul.msk.f32.vlgmr.msrb.gmra.mxu0 %vm359_vm11, %v2064_v0 }
 0x74a   :  { %v1155_v46 = vpop.f32.mrf.mxu2 }
 0x74b   :  { %v1225_v48 = vadd.f32 %v3410_v29, %v1155_v46 }
 0x74d   :  { %v1613_v17 = vpop.f32.mrf.mxu0 }
 0x74e   :  { %2343 = vmatmul.msk.f32.gmra.mxu2 %vm359_vm11, %v1613_v17  ;;  %v2067_v44 = vpop.f32.mrf.mxu3 }
 0x74f   :  { %2372 = vmatmul.msk.f32.gmra.mxu0 %vm359_vm11, %v2067_v44 }
 0x752   :  { %v1158_v55 = vpop.f32.mrf.mxu2 }
 0x753   :  { %v1228_v17 = vadd.f32 %v3419_v39, %v1158_v55 }
 0x755   :  { %v1616_v23 = vpop.f32.mrf.mxu0 }
 0x756   :  { %2344 = vmatmul.msk.f32.gmra.mxu2 %vm359_vm11, %v1616_v23 }
 0x75a   :  { %v3781_v38 = vpop.f32.mrf.mxu2 }
 0x75b   :  { %v1231_v7 = vadd.f32 %v3430_v47, %v3781_v38 }
 0x75d   :  { %v1619_v12 = vpop.f32.mrf.mxu0 }
 0x75e   :  { %2345 = vmatmul.msk.f32.gmra.mxu2 %vm359_vm11, %v1619_v12 }
 0x762   :  { %v3784_v54 = vpop.f32.mrf.mxu2 }
 0x765   :  { %v1622_v60 = vpop.f32.mrf.mxu0 }
 0x766   :  { %2346 = vmatmul.msk.f32.gmra.mxu2 %vm359_vm11, %v1622_v60 }
 0x76a   :  { %v3786_v31 = vpop.f32.mrf.mxu2 }
 0x77a   :  { %v2070_v28 = vpop.f32.mrf.mxu3 }
 0x77b   :  { %2373 = vmatmul.msk.f32.gmra.mxu0 %vm359_vm11, %v2070_v28  ;;  %v2188_v28 = vld [vmem:[#allocation2 + $0x60] sm:$0xff] }
 0x782   :  { %v2073_v40 = vpop.f32.mrf.mxu3 }
 0x783   :  { %2374 = vmatmul.msk.f32.gmra.mxu0 %vm359_vm11, %v2073_v40 }
 0x78a   :  { %v2076_v56 = vpop.f32.mrf.mxu3 }
 0x78b   :  { %2375 = vmatmul.msk.f32.gmra.mxu0 %vm359_vm11, %v2076_v56 }
 0x792   :  { %v2079_v6 = vpop.f32.mrf.mxu3 }
 0x793   :  { %2376 = vmatmul.msk.f32.gmra.mxu0 %vm359_vm11, %v2079_v6 }
 0x79a   :  { %v2082_v20 = vpop.f32.mrf.mxu3 }
 0x79b   :  { %2377 = vmatmul.msk.f32.gmra.mxu0 %vm359_vm11, %v2082_v20 }
 0x7a2   :  { %v2085_v34 = vpop.f32.mrf.mxu3 }
 0x7a3   :  { %2378 = vmatmul.msk.f32.gmra.mxu0 %vm359_vm11, %v2085_v34  ;;  %v2181_v34 = vld [vmem:[#allocation2 + $0x28] sm:$0xff] }
 0x7b1   :  { %v1670_v18 = vpop.f32.mrf.mxu2 }
 0x7b2   :  { %v1694_v51 = vadd.f32 %v1670_v18, %v1216_v26  ;;  %v2189_v18 = vld [vmem:[#allocation2 + $0x68] sm:$0xff] }
 0x7b9   :  { %v1673_v3 = vpop.f32.mrf.mxu2 }
 0x7ba   :  { %v1695_v63 = vadd.f32 %v1673_v3, %v1219_v49 }
 0x7c1   :  { %v1676_v61 = vpop.f32.mrf.mxu2 }
 0x7c2   :  { %v1696_v59 = vadd.f32 %v1676_v61, %v1222_v19 }
 0x7c4   :  { %v2133_v1 = vpop.f32.mrf.mxu0 }
 0x7c5   :  { %v2157_v11 = vadd.f32 %v2133_v1, %v1694_v51  ;;  %v1234_v51 = vadd.f32 %v3447_v13, %v3784_v54 }
 0x7c7   :  { %v2168_v45 = vadd.f32 %v3789_v37, %v2157_v11 }
 0x7c9   :  { %v2192_v50 = vadd.f32 %v2176_v27, %v2168_v45  ;;  %v2200_v16 = vadd.f32 %v2184_v62, %v2168_v45  ;;  %v1679_v4 = vpop.f32.mrf.mxu2  ;;  %v2182_v62 = vld [vmem:[#allocation2 + $0x30] sm:$0xff] }
 0x7ca   :  { %v1697_v33 = vadd.f32 %v1679_v4, %v1225_v48  ;;  %v2190_v45 = vld [vmem:[#allocation2 + $0x70] sm:$0xff] }
 0x7cb   :  { %2208 = vst.msk [vmem:[#allocation5] sm:$0xff] %vm47_vm0, %v2192_v50  ;;  %v1237_v50 = vadd.f32 %v3457_v21, %v3786_v31 }
 0x7cc   :  { %2216 = vst.msk [vmem:[#allocation5 + $0x40] sm:$0xff] %vm47_vm0, %v2200_v16  ;;  %v2136_v36 = vpop.f32.mrf.mxu0 }
 0x7cd   :  { %v2158_v24 = vadd.f32 %v2136_v36, %v1695_v63 }
 0x7cf   :  { %v2169_v58 = vadd.f32 %v3789_v37, %v2158_v24  ;;  %v2183_v24 = vld [vmem:[#allocation2 + $0x38] sm:$0xff] }
 0x7d1   :  { %v2193_v32 = vadd.f32 %v2177_v57, %v2169_v58  ;;  %v2201_v10 = vadd.f32 %v2185_v35, %v2169_v58  ;;  %v1682_v52 = vpop.f32.mrf.mxu2  ;;  %v2191_v57 = vld [vmem:[#allocation2 + $0x78] sm:$0xff] }
 0x7d2   :  { %v1698_v12 = vadd.f32 %v1682_v52, %v1228_v17 }
 0x7d3   :  { %2209 = vst.msk [vmem:[#allocation5 + $0x8] sm:$0xff] %vm47_vm0, %v2193_v32 }
 0x7d4   :  { %2217 = vst.msk [vmem:[#allocation5 + $0x48] sm:$0xff] %vm47_vm0, %v2201_v10 }
 0x7d9   :  { %v1685_v29 = vpop.f32.mrf.mxu2 }
 0x7da   :  { %v1699_v39 = vadd.f32 %v1685_v29, %v1231_v7 }
 0x7e1   :  { %v1688_v20 = vpop.f32.mrf.mxu2 }
 0x7e2   :  { %v1700_v47 = vadd.f32 %v1688_v20, %v1234_v51 }
 0x7e9   :  { %v1691_v49 = vpop.f32.mrf.mxu2 }
 0x7ea   :  { %v1701_v13 = vadd.f32 %v1691_v49, %v1237_v50 }
 0x7f8   :  { %v2139_v5 = vpop.f32.mrf.mxu0 }
 0x7f9   :  { %v2159_v41 = vadd.f32 %v2139_v5, %v1696_v59 }
 0x7fb   :  { %v2170_v9 = vadd.f32 %v3789_v37, %v2159_v41 }
 0x7fd   :  { %v2194_v8 = vadd.f32 %v2178_v14, %v2170_v9  ;;  %v2202_v53 = vadd.f32 %v2186_v2, %v2170_v9 }
 0x7ff   :  { %2210 = vst.msk [vmem:[#allocation5 + $0x10] sm:$0xff] %vm47_vm0, %v2194_v8 }
 0x800   :  { %2218 = vst.msk [vmem:[#allocation5 + $0x50] sm:$0xff] %vm47_vm0, %v2202_v53  ;;  %v2142_v42 = vpop.f32.mrf.mxu0 }
 0x801   :  { %v2160_v30 = vadd.f32 %v2142_v42, %v1697_v33 }
 0x803   :  { %v2171_v0 = vadd.f32 %v3789_v37, %v2160_v30 }
 0x805   :  { %v2195_v44 = vadd.f32 %v2179_v15, %v2171_v0  ;;  %v2203_v23 = vadd.f32 %v2187_v25, %v2171_v0 }
 0x807   :  { %2211 = vst.msk [vmem:[#allocation5 + $0x18] sm:$0xff] %vm47_vm0, %v2195_v44 }
 0x808   :  { %2219 = vst.msk [vmem:[#allocation5 + $0x58] sm:$0xff] %vm47_vm0, %v2203_v23  ;;  %v2145_v60 = vpop.f32.mrf.mxu0 }
 0x809   :  { %v2161_v43 = vadd.f32 %v2145_v60, %v1698_v12 }
 0x80b   :  { %v2172_v40 = vadd.f32 %v3789_v37, %v2161_v43 }
 0x80d   :  { %v2196_v56 = vadd.f32 %v2180_v22, %v2172_v40  ;;  %v2204_v46 = vadd.f32 %v2188_v28, %v2172_v40 }
 0x80f   :  { %2212 = vst.msk [vmem:[#allocation5 + $0x20] sm:$0xff] %vm47_vm0, %v2196_v56 }
 0x810   :  { %2220 = vst.msk [vmem:[#allocation5 + $0x60] sm:$0xff] %vm47_vm0, %v2204_v46  ;;  %v2148_v6 = vpop.f32.mrf.mxu0 }
 0x811   :  { %v2162_v55 = vadd.f32 %v2148_v6, %v1699_v39 }
 0x813   :  { %v2173_v26 = vadd.f32 %v3789_v37, %v2162_v55 }
 0x815   :  { %v2197_v1 = vadd.f32 %v2181_v34, %v2173_v26  ;;  %v2205_v11 = vadd.f32 %v2189_v18, %v2173_v26 }
 0x817   :  { %2213 = vst.msk [vmem:[#allocation5 + $0x28] sm:$0xff] %vm47_vm0, %v2197_v1 }
 0x818   :  { %2221 = vst.msk [vmem:[#allocation5 + $0x68] sm:$0xff] %vm47_vm0, %v2205_v11  ;;  %v2151_v38 = vpop.f32.mrf.mxu0 }
 0x819   :  { %v2163_v27 = vadd.f32 %v2151_v38, %v1700_v47 }
 0x81b   :  { %v2174_v3 = vadd.f32 %v3789_v37, %v2163_v27 }
 0x81d   :  { %v2198_v16 = vadd.f32 %v2182_v62, %v2174_v3  ;;  %v2206_v63 = vadd.f32 %v2190_v45, %v2174_v3 }
 0x81f   :  { %2214 = vst.msk [vmem:[#allocation5 + $0x30] sm:$0xff] %vm47_vm0, %v2198_v16 }
 0x820   :  { %2222 = vst.msk [vmem:[#allocation5 + $0x70] sm:$0xff] %vm47_vm0, %v2206_v63  ;;  %v2154_v54 = vpop.f32.mrf.mxu0 }
 0x821   :  { %v2164_v36 = vadd.f32 %v2154_v54, %v1701_v13 }
 0x823   :  { %v2175_v35 = vadd.f32 %v3789_v37, %v2164_v36 }
 0x825   :  { %v2199_v21 = vadd.f32 %v2183_v24, %v2175_v35  ;;  %v2207_v31 = vadd.f32 %v2191_v57, %v2175_v35 }
 0x827   :  { %2215 = vst.msk [vmem:[#allocation5 + $0x38] sm:$0xff] %vm47_vm0, %v2199_v21 }
 0x828   :  { %2223 = vst.msk [vmem:[#allocation5 + $0x78] sm:$0xff] %vm47_vm0, %v2207_v31 }
 0x829   :  { %2236 = dma.vmem_to_hbm [thread:$0]  %s2229_s13, 2048, %s2231_s16, [#allocation4], %s2685_s20, %s2685_s20, %s2686_s21  }
 0x82a   :  { %2682 = dma.done.wait [#allocation4], 2048  }
 0x82b   :  { %2683 = vsyncadd [#allocation4], 4294965248 }
 0x82c   :  { %2241 = vsyncpa [#allocation3], 1 }
 0x82d   :  { %2242 = vsyncpa [#allocation4], 1 }

</bundles_post_ra>
